<compile_context>
chip_gen: v7x
topology: tpu7x:2x2x1
jax: 0.10.0
libtpu: 0.0.40
codegen_flags: <defaults>
</compile_context>

<pallas_src>
import jax
import jax.numpy as jnp
from jax.experimental import pallas as pl
from jax.experimental.pallas import tpu as pltpu


def lstm_ae_kernel(x_ref,                      # (T, Bp, I)
                   wxe_ref, whe_ref, be_ref,   # encoder: (I,4H), (H,4H), (1,4H)
                   wxd_ref, whd_ref, bd_ref,   # decoder: (H,4H), (H,4H), (1,4H)
                   wfc_ref, bfc_ref,           # fc (lane-padded): (H,Ip), (1,Ip)
                   out_ref):                   # (T, Bp, Ip)
    T, Bp, I = x_ref.shape
    H = whe_ref.shape[0]
    G = 4 * H

    # ---- one-time loads (hoisted out of the recurrences) ----
    whe = whe_ref[...]                         # (H, 4H)
    whd = whd_ref[...]                         # (H, 4H)
    be = be_ref[...]                           # (1, 4H)
    bd = bd_ref[...]                           # (1, 4H)
    wfc = wfc_ref[...]                         # (H, Ip)
    bfc = bfc_ref[...]                         # (1, Ip)

    # ---- hoisted encoder input projection: one big lane-dense MXU matmul,
    #      kept as a value (no scratch round trip on the serial path) ----
    x_flat = x_ref[...].reshape(T * Bp, I)
    xp = (jnp.dot(x_flat, wxe_ref[...], preferred_element_type=jnp.float32)
          + be).reshape(T, Bp, G)              # (T, Bp, 4H)

    def gates(pre, c):
        # Full-vreg EUP: sigmoid/tanh over the whole (Bp, 4H) row (4H = 128
        # lanes at H=32), then slice the i,f,g,o quarters — instead of four
        # quarter-width transcendentals per step.
        sg = jax.nn.sigmoid(pre)
        th = jnp.tanh(pre)
        i_g = sg[:, 0 * H:1 * H]
        f_g = sg[:, 1 * H:2 * H]
        o_g = sg[:, 3 * H:4 * H]
        g_g = th[:, 2 * H:3 * H]
        c_new = f_g * c + i_g * g_g
        h_new = o_g * jnp.tanh(c_new)
        return h_new, c_new

    h = jnp.zeros((Bp, H), jnp.float32)
    c = jnp.zeros((Bp, H), jnp.float32)

    # ---------------- Encoder recurrence (statically unrolled) --------------
    # Per step only the (Bp,H)@(H,4H) recurrent matmul remains.
    # NOTE: for further latency shaving one could keep whe/whd resident in the
    # MXU via pltpu.matmul_push_rhs / matmul_acc_lhs / matmul_pop; kept on
    # jnp.dot here for portability.
    for t in range(T):
        pre = xp[t] + jnp.dot(h, whe, preferred_element_type=jnp.float32)
        h, c = gates(pre, c)
    z = h

    # ---------------- Decoder: constant-z projection hoisted (done once) ----
    z_pre = jnp.dot(z, wxd_ref[...], preferred_element_type=jnp.float32) + bd

    h = jnp.zeros((Bp, H), jnp.float32)
    c = jnp.zeros((Bp, H), jnp.float32)
    for t in range(T):
        pre = z_pre + jnp.dot(h, whd, preferred_element_type=jnp.float32)
        h, c = gates(pre, c)
        # FC per step: off the recurrence critical path, fills MXU bubbles.
        # Ip >= 128 lanes -> unmasked full-lane stores.
        y_t = jnp.dot(h, wfc, preferred_element_type=jnp.float32) + bfc
        out_ref[t] = y_t.astype(out_ref.dtype)


@jax.jit
def lstm_ae_forward(x, params):
    """x: (B, T, I) float32 (batch_first).  Returns (B, T, I) reconstruction."""
    B, T, I = x.shape
    H = params["whe"].shape[0]
    G = 4 * H

    # Pad batch to the f32 sublane count (8). Larger B (up to 128/256 rows)
    # amortizes the serial recurrence over the MXU essentially for free.
    Bp = max(8, -(-B // 8) * 8)
    # Lane-dense output: pad FC output width to a multiple of 128 lanes so the
    # kernel's stores and HBM writeback are unmasked vsts (wrapper slices back).
    Ip = max(128, -(-I // 128) * 128)

    # Time-major layout for the recurrence (negligible cost at these shapes;
    # at scale, consume x via a BlockSpec index_map over a T-chunk grid instead).
    x_tbi = jnp.transpose(x, (1, 0, 2))                # (T, B, I)
    if Bp != B:
        x_tbi = jnp.pad(x_tbi, ((0, 0), (0, Bp - B), (0, 0)))

    wfc_p = jnp.pad(params["wfc"], ((0, 0), (0, Ip - I)))
    bfc_p = jnp.pad(params["bfc"], ((0, 0), (0, Ip - I)))

    # Everything lives whole in VMEM (no grid) -> size the scoped VMEM limit,
    # capped generation-aware (leave headroom for compiler-internal scratch).
    vmem_bytes = 4 * (
        T * Bp * I + T * Bp * Ip            # x + padded out
        + I * G + 3 * H * G + 2 * G         # gate weights + fused biases
        + H * Ip + Ip                       # fc (padded)
    )
    try:
        vmem_cap = int(pltpu.get_tpu_info().vmem_capacity_bytes)
    except Exception:
        vmem_cap = 64 << 20                  # conservative (v7x per-TC VMEM)
    vmem_limit = int(min(max(2 * vmem_bytes + (8 << 20), 16 << 20),
                         int(0.75 * vmem_cap)))

    out_tbi = pl.pallas_call(
        lstm_ae_kernel,
        out_shape=jax.ShapeDtypeStruct((T, Bp, Ip), jnp.float32),
        in_specs=[pl.BlockSpec(memory_space=pltpu.MemorySpace.VMEM)] * 9,
        out_specs=pl.BlockSpec(memory_space=pltpu.MemorySpace.VMEM),
        compiler_params=pltpu.CompilerParams(vmem_limit_bytes=vmem_limit),
    )(x_tbi,
      params["wxe"], params["whe"], params["be"],
      params["wxd"], params["whd"], params["bd"],
      wfc_p, bfc_p)

    # Drop batch/lane padding, back to (B, T, I).
    return jnp.transpose(out_tbi[:, :B, :I], (1, 0, 2))


def init_params(key, input_size, hidden_size):
    """Params mirroring nn.LSTM / nn.Linear, stored in fused-gate layout.

    Gate weights are concatenated along the last axis in PyTorch gate order
    (i, f, g, o), pre-transposed for right-multiplication:
      wx*: (in_dim, 4H),  wh*: (H, 4H),  b*: (1, 4H)  [b = b_ih + b_hh]
      wfc: (H, input_size), bfc: (1, input_size)
    """
    H = hidden_size
    ks = jax.random.split(key, 10)
    bound = 1.0 / jnp.sqrt(H)

    def u(k, shape):
        return jax.random.uniform(k, shape, jnp.float32, -bound, bound)

    return {
        "wxe": u(ks[0], (input_size, 4 * H)),
        "whe": u(ks[1], (H, 4 * H)),
        "be":  u(ks[2], (1, 4 * H)) + u(ks[3], (1, 4 * H)),
        "wxd": u(ks[4], (H, 4 * H)),
        "whd": u(ks[5], (H, 4 * H)),
        "bd":  u(ks[6], (1, 4 * H)) + u(ks[7], (1, 4 * H)),
        "wfc": u(ks[8], (H, input_size)),
        "bfc": u(ks[9], (1, input_size)),
    }


def ref_forward(x, p):
    """Pure-JAX reference of the same LSTM-AE forward for verification."""
    B, T, I = x.shape
    H = p["whe"].shape[0]

    def cell(x_t, h, c, wx, wh, b):
        pre = x_t @ wx + h @ wh + b
        i = jax.nn.sigmoid(pre[:, 0:H])
        f = jax.nn.sigmoid(pre[:, H:2 * H])
        g = jnp.tanh(pre[:, 2 * H:3 * H])
        o = jax.nn.sigmoid(pre[:, 3 * H:4 * H])
        c = f * c + i * g
        h = o * jnp.tanh(c)
        return h, c

    h = jnp.zeros((B, H), jnp.float32)
    c = jnp.zeros((B, H), jnp.float32)
    for t in range(T):
        h, c = cell(x[:, t, :], h, c, p["wxe"], p["whe"], p["be"])
    z = h

    h = jnp.zeros((B, H), jnp.float32)
    c = jnp.zeros((B, H), jnp.float32)
    outs = []
    for _ in range(T):
        h, c = cell(z, h, c, p["wxd"], p["whd"], p["bd"])
        outs.append(h @ p["wfc"] + p["bfc"])
    return jnp.stack(outs, axis=1)  # (B, T, I)


if __name__ == "__main__":
    B, T, I, H = 2, 8, 4, 32  # batch, seq_len, input_size, hidden_size

    key = jax.random.PRNGKey(0)
    k_x, k_p = jax.random.split(key)
    x = jax.random.normal(k_x, (B, T, I), jnp.float32)
    params = init_params(k_p, I, H)

    out = lstm_ae_forward(x, params)
    out = jax.block_until_ready(out)

    ref = ref_forward(x, params)
    assert out.shape == (B, T, I), out.shape
    assert jnp.allclose(out, ref, atol=5e-5, rtol=5e-5), (
        "Pallas output mismatch vs JAX reference")

    print("KERNEL_OK")
</pallas_src>

<mosaic_0001>
module attributes {stable_mosaic.version = 11 : i64} {
  func.func @lstm_ae_kernel(%arg0: memref<8x8x4xf32, #tpu.memory_space<vmem>>, %arg1: memref<4x128xf32, #tpu.memory_space<vmem>>, %arg2: memref<32x128xf32, #tpu.memory_space<vmem>>, %arg3: memref<1x128xf32, #tpu.memory_space<vmem>>, %arg4: memref<32x128xf32, #tpu.memory_space<vmem>>, %arg5: memref<32x128xf32, #tpu.memory_space<vmem>>, %arg6: memref<1x128xf32, #tpu.memory_space<vmem>>, %arg7: memref<32x128xf32, #tpu.memory_space<vmem>>, %arg8: memref<1x128xf32, #tpu.memory_space<vmem>>, %arg9: memref<8x8x128xf32, #tpu.memory_space<vmem>>) attributes {dimension_semantics = [], scalar_prefetch = 0 : i64, scratch_operands = 0 : i64, tpu.core_type = #tpu.core_type<tc>} {
    %c0 = arith.constant 0 : index
    %c0_0 = arith.constant 0 : index
    %0 = vector.load %arg2[%c0, %c0_0] : memref<32x128xf32, #tpu.memory_space<vmem>>, vector<32x128xf32>
    %c0_1 = arith.constant 0 : index
    %c0_2 = arith.constant 0 : index
    %1 = vector.load %arg5[%c0_1, %c0_2] : memref<32x128xf32, #tpu.memory_space<vmem>>, vector<32x128xf32>
    %c0_3 = arith.constant 0 : index
    %c0_4 = arith.constant 0 : index
    %2 = vector.load %arg3[%c0_3, %c0_4] : memref<1x128xf32, #tpu.memory_space<vmem>>, vector<1x128xf32>
    %c0_5 = arith.constant 0 : index
    %c0_6 = arith.constant 0 : index
    %3 = vector.load %arg6[%c0_5, %c0_6] : memref<1x128xf32, #tpu.memory_space<vmem>>, vector<1x128xf32>
    %c0_7 = arith.constant 0 : index
    %c0_8 = arith.constant 0 : index
    %4 = vector.load %arg7[%c0_7, %c0_8] : memref<32x128xf32, #tpu.memory_space<vmem>>, vector<32x128xf32>
    %c0_9 = arith.constant 0 : index
    %c0_10 = arith.constant 0 : index
    %5 = vector.load %arg8[%c0_9, %c0_10] : memref<1x128xf32, #tpu.memory_space<vmem>>, vector<1x128xf32>
    %c0_11 = arith.constant 0 : index
    %c0_12 = arith.constant 0 : index
    %c0_13 = arith.constant 0 : index
    %6 = vector.load %arg0[%c0_11, %c0_12, %c0_13] : memref<8x8x4xf32, #tpu.memory_space<vmem>>, vector<8x8x4xf32>
    %7 = vector.shape_cast %6 : vector<8x8x4xf32> to vector<64x4xf32>
    %c0_14 = arith.constant 0 : index
    %c0_15 = arith.constant 0 : index
    %8 = vector.load %arg1[%c0_14, %c0_15] : memref<4x128xf32, #tpu.memory_space<vmem>>, vector<4x128xf32>
    %cst = arith.constant dense<0.000000e+00> : vector<64x128xf32>
    %9 = tpu.matmul %7, %8, %cst {dimension_numbers = #tpu.dot_dimension_numbers<[1], [0], [0], [1], [0, 0, 1, 1], [], []>} : vector<64x4xf32>, vector<4x128xf32>, vector<64x128xf32> -> vector<64x128xf32>
    %10 = vector.broadcast %2 : vector<1x128xf32> to vector<64x128xf32>
    %11 = arith.addf %9, %10 : vector<64x128xf32>
    %12 = vector.shape_cast %11 : vector<64x128xf32> to vector<8x8x128xf32>
    %cst_16 = arith.constant 0.000000e+00 : f32
    %13 = vector.broadcast %cst_16 : f32 to vector<8x32xf32>
    %cst_17 = arith.constant 0.000000e+00 : f32
    %14 = vector.broadcast %cst_17 : f32 to vector<8x32xf32>
    %15 = vector.extract_strided_slice %12 {offsets = [0, 0, 0], sizes = [1, 8, 128], strides = [1, 1, 1]} : vector<8x8x128xf32> to vector<1x8x128xf32>
    %16 = vector.shape_cast %15 : vector<1x8x128xf32> to vector<8x128xf32>
    %cst_18 = arith.constant dense<0.000000e+00> : vector<8x128xf32>
    %17 = tpu.matmul %13, %0, %cst_18 {dimension_numbers = #tpu.dot_dimension_numbers<[1], [0], [0], [1], [0, 0, 1, 1], [], []>} : vector<8x32xf32>, vector<32x128xf32>, vector<8x128xf32> -> vector<8x128xf32>
    %18 = arith.addf %16, %17 : vector<8x128xf32>
    %19 = arith.negf %18 : vector<8x128xf32>
    %20 = math.exp %19 : vector<8x128xf32>
    %cst_19 = arith.constant 1.000000e+00 : f32
    %21 = vector.broadcast %cst_19 : f32 to vector<8x128xf32>
    %22 = arith.addf %21, %20 : vector<8x128xf32>
    %23 = arith.divf %21, %22 : vector<8x128xf32>
    %24 = math.tanh %18 : vector<8x128xf32>
    %25 = vector.extract_strided_slice %23 {offsets = [0, 0], sizes = [8, 32], strides = [1, 1]} : vector<8x128xf32> to vector<8x32xf32>
    %26 = vector.extract_strided_slice %23 {offsets = [0, 32], sizes = [8, 32], strides = [1, 1]} : vector<8x128xf32> to vector<8x32xf32>
    %27 = vector.extract_strided_slice %23 {offsets = [0, 96], sizes = [8, 32], strides = [1, 1]} : vector<8x128xf32> to vector<8x32xf32>
    %28 = vector.extract_strided_slice %24 {offsets = [0, 64], sizes = [8, 32], strides = [1, 1]} : vector<8x128xf32> to vector<8x32xf32>
    %29 = arith.mulf %26, %14 : vector<8x32xf32>
    %30 = arith.mulf %25, %28 : vector<8x32xf32>
    %31 = arith.addf %29, %30 : vector<8x32xf32>
    %32 = math.tanh %31 : vector<8x32xf32>
    %33 = arith.mulf %27, %32 : vector<8x32xf32>
    %34 = vector.extract_strided_slice %12 {offsets = [1, 0, 0], sizes = [1, 8, 128], strides = [1, 1, 1]} : vector<8x8x128xf32> to vector<1x8x128xf32>
    %35 = vector.shape_cast %34 : vector<1x8x128xf32> to vector<8x128xf32>
    %cst_20 = arith.constant dense<0.000000e+00> : vector<8x128xf32>
    %36 = tpu.matmul %33, %0, %cst_20 {dimension_numbers = #tpu.dot_dimension_numbers<[1], [0], [0], [1], [0, 0, 1, 1], [], []>} : vector<8x32xf32>, vector<32x128xf32>, vector<8x128xf32> -> vector<8x128xf32>
    %37 = arith.addf %35, %36 : vector<8x128xf32>
    %38 = arith.negf %37 : vector<8x128xf32>
    %39 = math.exp %38 : vector<8x128xf32>
    %cst_21 = arith.constant 1.000000e+00 : f32
    %40 = vector.broadcast %cst_21 : f32 to vector<8x128xf32>
    %41 = arith.addf %40, %39 : vector<8x128xf32>
    %42 = arith.divf %40, %41 : vector<8x128xf32>
    %43 = math.tanh %37 : vector<8x128xf32>
    %44 = vector.extract_strided_slice %42 {offsets = [0, 0], sizes = [8, 32], strides = [1, 1]} : vector<8x128xf32> to vector<8x32xf32>
    %45 = vector.extract_strided_slice %42 {offsets = [0, 32], sizes = [8, 32], strides = [1, 1]} : vector<8x128xf32> to vector<8x32xf32>
    %46 = vector.extract_strided_slice %42 {offsets = [0, 96], sizes = [8, 32], strides = [1, 1]} : vector<8x128xf32> to vector<8x32xf32>
    %47 = vector.extract_strided_slice %43 {offsets = [0, 64], sizes = [8, 32], strides = [1, 1]} : vector<8x128xf32> to vector<8x32xf32>
    %48 = arith.mulf %45, %31 : vector<8x32xf32>
    %49 = arith.mulf %44, %47 : vector<8x32xf32>
    %50 = arith.addf %48, %49 : vector<8x32xf32>
    %51 = math.tanh %50 : vector<8x32xf32>
    %52 = arith.mulf %46, %51 : vector<8x32xf32>
    %53 = vector.extract_strided_slice %12 {offsets = [2, 0, 0], sizes = [1, 8, 128], strides = [1, 1, 1]} : vector<8x8x128xf32> to vector<1x8x128xf32>
    %54 = vector.shape_cast %53 : vector<1x8x128xf32> to vector<8x128xf32>
    %cst_22 = arith.constant dense<0.000000e+00> : vector<8x128xf32>
    %55 = tpu.matmul %52, %0, %cst_22 {dimension_numbers = #tpu.dot_dimension_numbers<[1], [0], [0], [1], [0, 0, 1, 1], [], []>} : vector<8x32xf32>, vector<32x128xf32>, vector<8x128xf32> -> vector<8x128xf32>
    %56 = arith.addf %54, %55 : vector<8x128xf32>
    %57 = arith.negf %56 : vector<8x128xf32>
    %58 = math.exp %57 : vector<8x128xf32>
    %cst_23 = arith.constant 1.000000e+00 : f32
    %59 = vector.broadcast %cst_23 : f32 to vector<8x128xf32>
    %60 = arith.addf %59, %58 : vector<8x128xf32>
    %61 = arith.divf %59, %60 : vector<8x128xf32>
    %62 = math.tanh %56 : vector<8x128xf32>
    %63 = vector.extract_strided_slice %61 {offsets = [0, 0], sizes = [8, 32], strides = [1, 1]} : vector<8x128xf32> to vector<8x32xf32>
    %64 = vector.extract_strided_slice %61 {offsets = [0, 32], sizes = [8, 32], strides = [1, 1]} : vector<8x128xf32> to vector<8x32xf32>
    %65 = vector.extract_strided_slice %61 {offsets = [0, 96], sizes = [8, 32], strides = [1, 1]} : vector<8x128xf32> to vector<8x32xf32>
    %66 = vector.extract_strided_slice %62 {offsets = [0, 64], sizes = [8, 32], strides = [1, 1]} : vector<8x128xf32> to vector<8x32xf32>
    %67 = arith.mulf %64, %50 : vector<8x32xf32>
    %68 = arith.mulf %63, %66 : vector<8x32xf32>
    %69 = arith.addf %67, %68 : vector<8x32xf32>
    %70 = math.tanh %69 : vector<8x32xf32>
    %71 = arith.mulf %65, %70 : vector<8x32xf32>
    %72 = vector.extract_strided_slice %12 {offsets = [3, 0, 0], sizes = [1, 8, 128], strides = [1, 1, 1]} : vector<8x8x128xf32> to vector<1x8x128xf32>
    %73 = vector.shape_cast %72 : vector<1x8x128xf32> to vector<8x128xf32>
    %cst_24 = arith.constant dense<0.000000e+00> : vector<8x128xf32>
    %74 = tpu.matmul %71, %0, %cst_24 {dimension_numbers = #tpu.dot_dimension_numbers<[1], [0], [0], [1], [0, 0, 1, 1], [], []>} : vector<8x32xf32>, vector<32x128xf32>, vector<8x128xf32> -> vector<8x128xf32>
    %75 = arith.addf %73, %74 : vector<8x128xf32>
    %76 = arith.negf %75 : vector<8x128xf32>
    %77 = math.exp %76 : vector<8x128xf32>
    %cst_25 = arith.constant 1.000000e+00 : f32
    %78 = vector.broadcast %cst_25 : f32 to vector<8x128xf32>
    %79 = arith.addf %78, %77 : vector<8x128xf32>
    %80 = arith.divf %78, %79 : vector<8x128xf32>
    %81 = math.tanh %75 : vector<8x128xf32>
    %82 = vector.extract_strided_slice %80 {offsets = [0, 0], sizes = [8, 32], strides = [1, 1]} : vector<8x128xf32> to vector<8x32xf32>
    %83 = vector.extract_strided_slice %80 {offsets = [0, 32], sizes = [8, 32], strides = [1, 1]} : vector<8x128xf32> to vector<8x32xf32>
    %84 = vector.extract_strided_slice %80 {offsets = [0, 96], sizes = [8, 32], strides = [1, 1]} : vector<8x128xf32> to vector<8x32xf32>
    %85 = vector.extract_strided_slice %81 {offsets = [0, 64], sizes = [8, 32], strides = [1, 1]} : vector<8x128xf32> to vector<8x32xf32>
    %86 = arith.mulf %83, %69 : vector<8x32xf32>
    %87 = arith.mulf %82, %85 : vector<8x32xf32>
    %88 = arith.addf %86, %87 : vector<8x32xf32>
    %89 = math.tanh %88 : vector<8x32xf32>
    %90 = arith.mulf %84, %89 : vector<8x32xf32>
    %91 = vector.extract_strided_slice %12 {offsets = [4, 0, 0], sizes = [1, 8, 128], strides = [1, 1, 1]} : vector<8x8x128xf32> to vector<1x8x128xf32>
    %92 = vector.shape_cast %91 : vector<1x8x128xf32> to vector<8x128xf32>
    %cst_26 = arith.constant dense<0.000000e+00> : vector<8x128xf32>
    %93 = tpu.matmul %90, %0, %cst_26 {dimension_numbers = #tpu.dot_dimension_numbers<[1], [0], [0], [1], [0, 0, 1, 1], [], []>} : vector<8x32xf32>, vector<32x128xf32>, vector<8x128xf32> -> vector<8x128xf32>
    %94 = arith.addf %92, %93 : vector<8x128xf32>
    %95 = arith.negf %94 : vector<8x128xf32>
    %96 = math.exp %95 : vector<8x128xf32>
    %cst_27 = arith.constant 1.000000e+00 : f32
    %97 = vector.broadcast %cst_27 : f32 to vector<8x128xf32>
    %98 = arith.addf %97, %96 : vector<8x128xf32>
    %99 = arith.divf %97, %98 : vector<8x128xf32>
    %100 = math.tanh %94 : vector<8x128xf32>
    %101 = vector.extract_strided_slice %99 {offsets = [0, 0], sizes = [8, 32], strides = [1, 1]} : vector<8x128xf32> to vector<8x32xf32>
    %102 = vector.extract_strided_slice %99 {offsets = [0, 32], sizes = [8, 32], strides = [1, 1]} : vector<8x128xf32> to vector<8x32xf32>
    %103 = vector.extract_strided_slice %99 {offsets = [0, 96], sizes = [8, 32], strides = [1, 1]} : vector<8x128xf32> to vector<8x32xf32>
    %104 = vector.extract_strided_slice %100 {offsets = [0, 64], sizes = [8, 32], strides = [1, 1]} : vector<8x128xf32> to vector<8x32xf32>
    %105 = arith.mulf %102, %88 : vector<8x32xf32>
    %106 = arith.mulf %101, %104 : vector<8x32xf32>
    %107 = arith.addf %105, %106 : vector<8x32xf32>
    %108 = math.tanh %107 : vector<8x32xf32>
    %109 = arith.mulf %103, %108 : vector<8x32xf32>
    %110 = vector.extract_strided_slice %12 {offsets = [5, 0, 0], sizes = [1, 8, 128], strides = [1, 1, 1]} : vector<8x8x128xf32> to vector<1x8x128xf32>
    %111 = vector.shape_cast %110 : vector<1x8x128xf32> to vector<8x128xf32>
    %cst_28 = arith.constant dense<0.000000e+00> : vector<8x128xf32>
    %112 = tpu.matmul %109, %0, %cst_28 {dimension_numbers = #tpu.dot_dimension_numbers<[1], [0], [0], [1], [0, 0, 1, 1], [], []>} : vector<8x32xf32>, vector<32x128xf32>, vector<8x128xf32> -> vector<8x128xf32>
    %113 = arith.addf %111, %112 : vector<8x128xf32>
    %114 = arith.negf %113 : vector<8x128xf32>
    %115 = math.exp %114 : vector<8x128xf32>
    %cst_29 = arith.constant 1.000000e+00 : f32
    %116 = vector.broadcast %cst_29 : f32 to vector<8x128xf32>
    %117 = arith.addf %116, %115 : vector<8x128xf32>
    %118 = arith.divf %116, %117 : vector<8x128xf32>
    %119 = math.tanh %113 : vector<8x128xf32>
    %120 = vector.extract_strided_slice %118 {offsets = [0, 0], sizes = [8, 32], strides = [1, 1]} : vector<8x128xf32> to vector<8x32xf32>
    %121 = vector.extract_strided_slice %118 {offsets = [0, 32], sizes = [8, 32], strides = [1, 1]} : vector<8x128xf32> to vector<8x32xf32>
    %122 = vector.extract_strided_slice %118 {offsets = [0, 96], sizes = [8, 32], strides = [1, 1]} : vector<8x128xf32> to vector<8x32xf32>
    %123 = vector.extract_strided_slice %119 {offsets = [0, 64], sizes = [8, 32], strides = [1, 1]} : vector<8x128xf32> to vector<8x32xf32>
    %124 = arith.mulf %121, %107 : vector<8x32xf32>
    %125 = arith.mulf %120, %123 : vector<8x32xf32>
    %126 = arith.addf %124, %125 : vector<8x32xf32>
    %127 = math.tanh %126 : vector<8x32xf32>
    %128 = arith.mulf %122, %127 : vector<8x32xf32>
    %129 = vector.extract_strided_slice %12 {offsets = [6, 0, 0], sizes = [1, 8, 128], strides = [1, 1, 1]} : vector<8x8x128xf32> to vector<1x8x128xf32>
    %130 = vector.shape_cast %129 : vector<1x8x128xf32> to vector<8x128xf32>
    %cst_30 = arith.constant dense<0.000000e+00> : vector<8x128xf32>
    %131 = tpu.matmul %128, %0, %cst_30 {dimension_numbers = #tpu.dot_dimension_numbers<[1], [0], [0], [1], [0, 0, 1, 1], [], []>} : vector<8x32xf32>, vector<32x128xf32>, vector<8x128xf32> -> vector<8x128xf32>
    %132 = arith.addf %130, %131 : vector<8x128xf32>
    %133 = arith.negf %132 : vector<8x128xf32>
    %134 = math.exp %133 : vector<8x128xf32>
    %cst_31 = arith.constant 1.000000e+00 : f32
    %135 = vector.broadcast %cst_31 : f32 to vector<8x128xf32>
    %136 = arith.addf %135, %134 : vector<8x128xf32>
    %137 = arith.divf %135, %136 : vector<8x128xf32>
    %138 = math.tanh %132 : vector<8x128xf32>
    %139 = vector.extract_strided_slice %137 {offsets = [0, 0], sizes = [8, 32], strides = [1, 1]} : vector<8x128xf32> to vector<8x32xf32>
    %140 = vector.extract_strided_slice %137 {offsets = [0, 32], sizes = [8, 32], strides = [1, 1]} : vector<8x128xf32> to vector<8x32xf32>
    %141 = vector.extract_strided_slice %137 {offsets = [0, 96], sizes = [8, 32], strides = [1, 1]} : vector<8x128xf32> to vector<8x32xf32>
    %142 = vector.extract_strided_slice %138 {offsets = [0, 64], sizes = [8, 32], strides = [1, 1]} : vector<8x128xf32> to vector<8x32xf32>
    %143 = arith.mulf %140, %126 : vector<8x32xf32>
    %144 = arith.mulf %139, %142 : vector<8x32xf32>
    %145 = arith.addf %143, %144 : vector<8x32xf32>
    %146 = math.tanh %145 : vector<8x32xf32>
    %147 = arith.mulf %141, %146 : vector<8x32xf32>
    %148 = vector.extract_strided_slice %12 {offsets = [7, 0, 0], sizes = [1, 8, 128], strides = [1, 1, 1]} : vector<8x8x128xf32> to vector<1x8x128xf32>
    %149 = vector.shape_cast %148 : vector<1x8x128xf32> to vector<8x128xf32>
    %cst_32 = arith.constant dense<0.000000e+00> : vector<8x128xf32>
    %150 = tpu.matmul %147, %0, %cst_32 {dimension_numbers = #tpu.dot_dimension_numbers<[1], [0], [0], [1], [0, 0, 1, 1], [], []>} : vector<8x32xf32>, vector<32x128xf32>, vector<8x128xf32> -> vector<8x128xf32>
    %151 = arith.addf %149, %150 : vector<8x128xf32>
    %152 = arith.negf %151 : vector<8x128xf32>
    %153 = math.exp %152 : vector<8x128xf32>
    %cst_33 = arith.constant 1.000000e+00 : f32
    %154 = vector.broadcast %cst_33 : f32 to vector<8x128xf32>
    %155 = arith.addf %154, %153 : vector<8x128xf32>
    %156 = arith.divf %154, %155 : vector<8x128xf32>
    %157 = math.tanh %151 : vector<8x128xf32>
    %158 = vector.extract_strided_slice %156 {offsets = [0, 0], sizes = [8, 32], strides = [1, 1]} : vector<8x128xf32> to vector<8x32xf32>
    %159 = vector.extract_strided_slice %156 {offsets = [0, 32], sizes = [8, 32], strides = [1, 1]} : vector<8x128xf32> to vector<8x32xf32>
    %160 = vector.extract_strided_slice %156 {offsets = [0, 96], sizes = [8, 32], strides = [1, 1]} : vector<8x128xf32> to vector<8x32xf32>
    %161 = vector.extract_strided_slice %157 {offsets = [0, 64], sizes = [8, 32], strides = [1, 1]} : vector<8x128xf32> to vector<8x32xf32>
    %162 = arith.mulf %159, %145 : vector<8x32xf32>
    %163 = arith.mulf %158, %161 : vector<8x32xf32>
    %164 = arith.addf %162, %163 : vector<8x32xf32>
    %165 = math.tanh %164 : vector<8x32xf32>
    %166 = arith.mulf %160, %165 : vector<8x32xf32>
    %c0_34 = arith.constant 0 : index
    %c0_35 = arith.constant 0 : index
    %167 = vector.load %arg4[%c0_34, %c0_35] : memref<32x128xf32, #tpu.memory_space<vmem>>, vector<32x128xf32>
    %cst_36 = arith.constant dense<0.000000e+00> : vector<8x128xf32>
    %168 = tpu.matmul %166, %167, %cst_36 {dimension_numbers = #tpu.dot_dimension_numbers<[1], [0], [0], [1], [0, 0, 1, 1], [], []>} : vector<8x32xf32>, vector<32x128xf32>, vector<8x128xf32> -> vector<8x128xf32>
    %169 = vector.broadcast %3 : vector<1x128xf32> to vector<8x128xf32>
    %170 = arith.addf %168, %169 : vector<8x128xf32>
    %cst_37 = arith.constant 0.000000e+00 : f32
    %171 = vector.broadcast %cst_37 : f32 to vector<8x32xf32>
    %cst_38 = arith.constant 0.000000e+00 : f32
    %172 = vector.broadcast %cst_38 : f32 to vector<8x32xf32>
    %cst_39 = arith.constant dense<0.000000e+00> : vector<8x128xf32>
    %173 = tpu.matmul %171, %1, %cst_39 {dimension_numbers = #tpu.dot_dimension_numbers<[1], [0], [0], [1], [0, 0, 1, 1], [], []>} : vector<8x32xf32>, vector<32x128xf32>, vector<8x128xf32> -> vector<8x128xf32>
    %174 = arith.addf %170, %173 : vector<8x128xf32>
    %175 = arith.negf %174 : vector<8x128xf32>
    %176 = math.exp %175 : vector<8x128xf32>
    %cst_40 = arith.constant 1.000000e+00 : f32
    %177 = vector.broadcast %cst_40 : f32 to vector<8x128xf32>
    %178 = arith.addf %177, %176 : vector<8x128xf32>
    %179 = arith.divf %177, %178 : vector<8x128xf32>
    %180 = math.tanh %174 : vector<8x128xf32>
    %181 = vector.extract_strided_slice %179 {offsets = [0, 0], sizes = [8, 32], strides = [1, 1]} : vector<8x128xf32> to vector<8x32xf32>
    %182 = vector.extract_strided_slice %179 {offsets = [0, 32], sizes = [8, 32], strides = [1, 1]} : vector<8x128xf32> to vector<8x32xf32>
    %183 = vector.extract_strided_slice %179 {offsets = [0, 96], sizes = [8, 32], strides = [1, 1]} : vector<8x128xf32> to vector<8x32xf32>
    %184 = vector.extract_strided_slice %180 {offsets = [0, 64], sizes = [8, 32], strides = [1, 1]} : vector<8x128xf32> to vector<8x32xf32>
    %185 = arith.mulf %182, %172 : vector<8x32xf32>
    %186 = arith.mulf %181, %184 : vector<8x32xf32>
    %187 = arith.addf %185, %186 : vector<8x32xf32>
    %188 = math.tanh %187 : vector<8x32xf32>
    %189 = arith.mulf %183, %188 : vector<8x32xf32>
    %cst_41 = arith.constant dense<0.000000e+00> : vector<8x128xf32>
    %190 = tpu.matmul %189, %4, %cst_41 {dimension_numbers = #tpu.dot_dimension_numbers<[1], [0], [0], [1], [0, 0, 1, 1], [], []>} : vector<8x32xf32>, vector<32x128xf32>, vector<8x128xf32> -> vector<8x128xf32>
    %191 = vector.broadcast %5 : vector<1x128xf32> to vector<8x128xf32>
    %192 = arith.addf %190, %191 : vector<8x128xf32>
    %c0_42 = arith.constant 0 : index
    %c0_43 = arith.constant 0 : index
    %c0_44 = arith.constant 0 : index
    %193 = vector.load %arg9[%c0_42, %c0_43, %c0_44] : memref<8x8x128xf32, #tpu.memory_space<vmem>>, vector<1x8x128xf32>
    %194 = vector.shape_cast %193 : vector<1x8x128xf32> to vector<8x128xf32>
    %195 = vector.shape_cast %192 : vector<8x128xf32> to vector<1x8x128xf32>
    tpu.vector_store %arg9[%c0_42, %c0_43, %c0_44], %195 {strides = array<i32>} : memref<8x8x128xf32, #tpu.memory_space<vmem>>, vector<1x8x128xf32>,
    %cst_45 = arith.constant dense<0.000000e+00> : vector<8x128xf32>
    %196 = tpu.matmul %189, %1, %cst_45 {dimension_numbers = #tpu.dot_dimension_numbers<[1], [0], [0], [1], [0, 0, 1, 1], [], []>} : vector<8x32xf32>, vector<32x128xf32>, vector<8x128xf32> -> vector<8x128xf32>
    %197 = arith.addf %170, %196 : vector<8x128xf32>
    %198 = arith.negf %197 : vector<8x128xf32>
    %199 = math.exp %198 : vector<8x128xf32>
    %cst_46 = arith.constant 1.000000e+00 : f32
    %200 = vector.broadcast %cst_46 : f32 to vector<8x128xf32>
    %201 = arith.addf %200, %199 : vector<8x128xf32>
    %202 = arith.divf %200, %201 : vector<8x128xf32>
    %203 = math.tanh %197 : vector<8x128xf32>
    %204 = vector.extract_strided_slice %202 {offsets = [0, 0], sizes = [8, 32], strides = [1, 1]} : vector<8x128xf32> to vector<8x32xf32>
    %205 = vector.extract_strided_slice %202 {offsets = [0, 32], sizes = [8, 32], strides = [1, 1]} : vector<8x128xf32> to vector<8x32xf32>
    %206 = vector.extract_strided_slice %202 {offsets = [0, 96], sizes = [8, 32], strides = [1, 1]} : vector<8x128xf32> to vector<8x32xf32>
    %207 = vector.extract_strided_slice %203 {offsets = [0, 64], sizes = [8, 32], strides = [1, 1]} : vector<8x128xf32> to vector<8x32xf32>
    %208 = arith.mulf %205, %187 : vector<8x32xf32>
    %209 = arith.mulf %204, %207 : vector<8x32xf32>
    %210 = arith.addf %208, %209 : vector<8x32xf32>
    %211 = math.tanh %210 : vector<8x32xf32>
    %212 = arith.mulf %206, %211 : vector<8x32xf32>
    %cst_47 = arith.constant dense<0.000000e+00> : vector<8x128xf32>
    %213 = tpu.matmul %212, %4, %cst_47 {dimension_numbers = #tpu.dot_dimension_numbers<[1], [0], [0], [1], [0, 0, 1, 1], [], []>} : vector<8x32xf32>, vector<32x128xf32>, vector<8x128xf32> -> vector<8x128xf32>
    %214 = vector.broadcast %5 : vector<1x128xf32> to vector<8x128xf32>
    %215 = arith.addf %213, %214 : vector<8x128xf32>
    %c1 = arith.constant 1 : index
    %c0_48 = arith.constant 0 : index
    %c0_49 = arith.constant 0 : index
    %216 = vector.load %arg9[%c1, %c0_48, %c0_49] : memref<8x8x128xf32, #tpu.memory_space<vmem>>, vector<1x8x128xf32>
    %217 = vector.shape_cast %216 : vector<1x8x128xf32> to vector<8x128xf32>
    %218 = vector.shape_cast %215 : vector<8x128xf32> to vector<1x8x128xf32>
    tpu.vector_store %arg9[%c1, %c0_48, %c0_49], %218 {strides = array<i32>} : memref<8x8x128xf32, #tpu.memory_space<vmem>>, vector<1x8x128xf32>,
    %cst_50 = arith.constant dense<0.000000e+00> : vector<8x128xf32>
    %219 = tpu.matmul %212, %1, %cst_50 {dimension_numbers = #tpu.dot_dimension_numbers<[1], [0], [0], [1], [0, 0, 1, 1], [], []>} : vector<8x32xf32>, vector<32x128xf32>, vector<8x128xf32> -> vector<8x128xf32>
    %220 = arith.addf %170, %219 : vector<8x128xf32>
    %221 = arith.negf %220 : vector<8x128xf32>
    %222 = math.exp %221 : vector<8x128xf32>
    %cst_51 = arith.constant 1.000000e+00 : f32
    %223 = vector.broadcast %cst_51 : f32 to vector<8x128xf32>
    %224 = arith.addf %223, %222 : vector<8x128xf32>
    %225 = arith.divf %223, %224 : vector<8x128xf32>
    %226 = math.tanh %220 : vector<8x128xf32>
    %227 = vector.extract_strided_slice %225 {offsets = [0, 0], sizes = [8, 32], strides = [1, 1]} : vector<8x128xf32> to vector<8x32xf32>
    %228 = vector.extract_strided_slice %225 {offsets = [0, 32], sizes = [8, 32], strides = [1, 1]} : vector<8x128xf32> to vector<8x32xf32>
    %229 = vector.extract_strided_slice %225 {offsets = [0, 96], sizes = [8, 32], strides = [1, 1]} : vector<8x128xf32> to vector<8x32xf32>
    %230 = vector.extract_strided_slice %226 {offsets = [0, 64], sizes = [8, 32], strides = [1, 1]} : vector<8x128xf32> to vector<8x32xf32>
    %231 = arith.mulf %228, %210 : vector<8x32xf32>
    %232 = arith.mulf %227, %230 : vector<8x32xf32>
    %233 = arith.addf %231, %232 : vector<8x32xf32>
    %234 = math.tanh %233 : vector<8x32xf32>
    %235 = arith.mulf %229, %234 : vector<8x32xf32>
    %cst_52 = arith.constant dense<0.000000e+00> : vector<8x128xf32>
    %236 = tpu.matmul %235, %4, %cst_52 {dimension_numbers = #tpu.dot_dimension_numbers<[1], [0], [0], [1], [0, 0, 1, 1], [], []>} : vector<8x32xf32>, vector<32x128xf32>, vector<8x128xf32> -> vector<8x128xf32>
    %237 = vector.broadcast %5 : vector<1x128xf32> to vector<8x128xf32>
    %238 = arith.addf %236, %237 : vector<8x128xf32>
    %c2 = arith.constant 2 : index
    %c0_53 = arith.constant 0 : index
    %c0_54 = arith.constant 0 : index
    %239 = vector.load %arg9[%c2, %c0_53, %c0_54] : memref<8x8x128xf32, #tpu.memory_space<vmem>>, vector<1x8x128xf32>
    %240 = vector.shape_cast %239 : vector<1x8x128xf32> to vector<8x128xf32>
    %241 = vector.shape_cast %238 : vector<8x128xf32> to vector<1x8x128xf32>
    tpu.vector_store %arg9[%c2, %c0_53, %c0_54], %241 {strides = array<i32>} : memref<8x8x128xf32, #tpu.memory_space<vmem>>, vector<1x8x128xf32>,
    %cst_55 = arith.constant dense<0.000000e+00> : vector<8x128xf32>
    %242 = tpu.matmul %235, %1, %cst_55 {dimension_numbers = #tpu.dot_dimension_numbers<[1], [0], [0], [1], [0, 0, 1, 1], [], []>} : vector<8x32xf32>, vector<32x128xf32>, vector<8x128xf32> -> vector<8x128xf32>
    %243 = arith.addf %170, %242 : vector<8x128xf32>
    %244 = arith.negf %243 : vector<8x128xf32>
    %245 = math.exp %244 : vector<8x128xf32>
    %cst_56 = arith.constant 1.000000e+00 : f32
    %246 = vector.broadcast %cst_56 : f32 to vector<8x128xf32>
    %247 = arith.addf %246, %245 : vector<8x128xf32>
    %248 = arith.divf %246, %247 : vector<8x128xf32>
    %249 = math.tanh %243 : vector<8x128xf32>
    %250 = vector.extract_strided_slice %248 {offsets = [0, 0], sizes = [8, 32], strides = [1, 1]} : vector<8x128xf32> to vector<8x32xf32>
    %251 = vector.extract_strided_slice %248 {offsets = [0, 32], sizes = [8, 32], strides = [1, 1]} : vector<8x128xf32> to vector<8x32xf32>
    %252 = vector.extract_strided_slice %248 {offsets = [0, 96], sizes = [8, 32], strides = [1, 1]} : vector<8x128xf32> to vector<8x32xf32>
    %253 = vector.extract_strided_slice %249 {offsets = [0, 64], sizes = [8, 32], strides = [1, 1]} : vector<8x128xf32> to vector<8x32xf32>
    %254 = arith.mulf %251, %233 : vector<8x32xf32>
    %255 = arith.mulf %250, %253 : vector<8x32xf32>
    %256 = arith.addf %254, %255 : vector<8x32xf32>
    %257 = math.tanh %256 : vector<8x32xf32>
    %258 = arith.mulf %252, %257 : vector<8x32xf32>
    %cst_57 = arith.constant dense<0.000000e+00> : vector<8x128xf32>
    %259 = tpu.matmul %258, %4, %cst_57 {dimension_numbers = #tpu.dot_dimension_numbers<[1], [0], [0], [1], [0, 0, 1, 1], [], []>} : vector<8x32xf32>, vector<32x128xf32>, vector<8x128xf32> -> vector<8x128xf32>
    %260 = vector.broadcast %5 : vector<1x128xf32> to vector<8x128xf32>
    %261 = arith.addf %259, %260 : vector<8x128xf32>
    %c3 = arith.constant 3 : index
    %c0_58 = arith.constant 0 : index
    %c0_59 = arith.constant 0 : index
    %262 = vector.load %arg9[%c3, %c0_58, %c0_59] : memref<8x8x128xf32, #tpu.memory_space<vmem>>, vector<1x8x128xf32>
    %263 = vector.shape_cast %262 : vector<1x8x128xf32> to vector<8x128xf32>
    %264 = vector.shape_cast %261 : vector<8x128xf32> to vector<1x8x128xf32>
    tpu.vector_store %arg9[%c3, %c0_58, %c0_59], %264 {strides = array<i32>} : memref<8x8x128xf32, #tpu.memory_space<vmem>>, vector<1x8x128xf32>,
    %cst_60 = arith.constant dense<0.000000e+00> : vector<8x128xf32>
    %265 = tpu.matmul %258, %1, %cst_60 {dimension_numbers = #tpu.dot_dimension_numbers<[1], [0], [0], [1], [0, 0, 1, 1], [], []>} : vector<8x32xf32>, vector<32x128xf32>, vector<8x128xf32> -> vector<8x128xf32>
    %266 = arith.addf %170, %265 : vector<8x128xf32>
    %267 = arith.negf %266 : vector<8x128xf32>
    %268 = math.exp %267 : vector<8x128xf32>
    %cst_61 = arith.constant 1.000000e+00 : f32
    %269 = vector.broadcast %cst_61 : f32 to vector<8x128xf32>
    %270 = arith.addf %269, %268 : vector<8x128xf32>
    %271 = arith.divf %269, %270 : vector<8x128xf32>
    %272 = math.tanh %266 : vector<8x128xf32>
    %273 = vector.extract_strided_slice %271 {offsets = [0, 0], sizes = [8, 32], strides = [1, 1]} : vector<8x128xf32> to vector<8x32xf32>
    %274 = vector.extract_strided_slice %271 {offsets = [0, 32], sizes = [8, 32], strides = [1, 1]} : vector<8x128xf32> to vector<8x32xf32>
    %275 = vector.extract_strided_slice %271 {offsets = [0, 96], sizes = [8, 32], strides = [1, 1]} : vector<8x128xf32> to vector<8x32xf32>
    %276 = vector.extract_strided_slice %272 {offsets = [0, 64], sizes = [8, 32], strides = [1, 1]} : vector<8x128xf32> to vector<8x32xf32>
    %277 = arith.mulf %274, %256 : vector<8x32xf32>
    %278 = arith.mulf %273, %276 : vector<8x32xf32>
    %279 = arith.addf %277, %278 : vector<8x32xf32>
    %280 = math.tanh %279 : vector<8x32xf32>
    %281 = arith.mulf %275, %280 : vector<8x32xf32>
    %cst_62 = arith.constant dense<0.000000e+00> : vector<8x128xf32>
    %282 = tpu.matmul %281, %4, %cst_62 {dimension_numbers = #tpu.dot_dimension_numbers<[1], [0], [0], [1], [0, 0, 1, 1], [], []>} : vector<8x32xf32>, vector<32x128xf32>, vector<8x128xf32> -> vector<8x128xf32>
    %283 = vector.broadcast %5 : vector<1x128xf32> to vector<8x128xf32>
    %284 = arith.addf %282, %283 : vector<8x128xf32>
    %c4 = arith.constant 4 : index
    %c0_63 = arith.constant 0 : index
    %c0_64 = arith.constant 0 : index
    %285 = vector.load %arg9[%c4, %c0_63, %c0_64] : memref<8x8x128xf32, #tpu.memory_space<vmem>>, vector<1x8x128xf32>
    %286 = vector.shape_cast %285 : vector<1x8x128xf32> to vector<8x128xf32>
    %287 = vector.shape_cast %284 : vector<8x128xf32> to vector<1x8x128xf32>
    tpu.vector_store %arg9[%c4, %c0_63, %c0_64], %287 {strides = array<i32>} : memref<8x8x128xf32, #tpu.memory_space<vmem>>, vector<1x8x128xf32>,
    %cst_65 = arith.constant dense<0.000000e+00> : vector<8x128xf32>
    %288 = tpu.matmul %281, %1, %cst_65 {dimension_numbers = #tpu.dot_dimension_numbers<[1], [0], [0], [1], [0, 0, 1, 1], [], []>} : vector<8x32xf32>, vector<32x128xf32>, vector<8x128xf32> -> vector<8x128xf32>
    %289 = arith.addf %170, %288 : vector<8x128xf32>
    %290 = arith.negf %289 : vector<8x128xf32>
    %291 = math.exp %290 : vector<8x128xf32>
    %cst_66 = arith.constant 1.000000e+00 : f32
    %292 = vector.broadcast %cst_66 : f32 to vector<8x128xf32>
    %293 = arith.addf %292, %291 : vector<8x128xf32>
    %294 = arith.divf %292, %293 : vector<8x128xf32>
    %295 = math.tanh %289 : vector<8x128xf32>
    %296 = vector.extract_strided_slice %294 {offsets = [0, 0], sizes = [8, 32], strides = [1, 1]} : vector<8x128xf32> to vector<8x32xf32>
    %297 = vector.extract_strided_slice %294 {offsets = [0, 32], sizes = [8, 32], strides = [1, 1]} : vector<8x128xf32> to vector<8x32xf32>
    %298 = vector.extract_strided_slice %294 {offsets = [0, 96], sizes = [8, 32], strides = [1, 1]} : vector<8x128xf32> to vector<8x32xf32>
    %299 = vector.extract_strided_slice %295 {offsets = [0, 64], sizes = [8, 32], strides = [1, 1]} : vector<8x128xf32> to vector<8x32xf32>
    %300 = arith.mulf %297, %279 : vector<8x32xf32>
    %301 = arith.mulf %296, %299 : vector<8x32xf32>
    %302 = arith.addf %300, %301 : vector<8x32xf32>
    %303 = math.tanh %302 : vector<8x32xf32>
    %304 = arith.mulf %298, %303 : vector<8x32xf32>
    %cst_67 = arith.constant dense<0.000000e+00> : vector<8x128xf32>
    %305 = tpu.matmul %304, %4, %cst_67 {dimension_numbers = #tpu.dot_dimension_numbers<[1], [0], [0], [1], [0, 0, 1, 1], [], []>} : vector<8x32xf32>, vector<32x128xf32>, vector<8x128xf32> -> vector<8x128xf32>
    %306 = vector.broadcast %5 : vector<1x128xf32> to vector<8x128xf32>
    %307 = arith.addf %305, %306 : vector<8x128xf32>
    %c5 = arith.constant 5 : index
    %c0_68 = arith.constant 0 : index
    %c0_69 = arith.constant 0 : index
    %308 = vector.load %arg9[%c5, %c0_68, %c0_69] : memref<8x8x128xf32, #tpu.memory_space<vmem>>, vector<1x8x128xf32>
    %309 = vector.shape_cast %308 : vector<1x8x128xf32> to vector<8x128xf32>
    %310 = vector.shape_cast %307 : vector<8x128xf32> to vector<1x8x128xf32>
    tpu.vector_store %arg9[%c5, %c0_68, %c0_69], %310 {strides = array<i32>} : memref<8x8x128xf32, #tpu.memory_space<vmem>>, vector<1x8x128xf32>,
    %cst_70 = arith.constant dense<0.000000e+00> : vector<8x128xf32>
    %311 = tpu.matmul %304, %1, %cst_70 {dimension_numbers = #tpu.dot_dimension_numbers<[1], [0], [0], [1], [0, 0, 1, 1], [], []>} : vector<8x32xf32>, vector<32x128xf32>, vector<8x128xf32> -> vector<8x128xf32>
    %312 = arith.addf %170, %311 : vector<8x128xf32>
    %313 = arith.negf %312 : vector<8x128xf32>
    %314 = math.exp %313 : vector<8x128xf32>
    %cst_71 = arith.constant 1.000000e+00 : f32
    %315 = vector.broadcast %cst_71 : f32 to vector<8x128xf32>
    %316 = arith.addf %315, %314 : vector<8x128xf32>
    %317 = arith.divf %315, %316 : vector<8x128xf32>
    %318 = math.tanh %312 : vector<8x128xf32>
    %319 = vector.extract_strided_slice %317 {offsets = [0, 0], sizes = [8, 32], strides = [1, 1]} : vector<8x128xf32> to vector<8x32xf32>
    %320 = vector.extract_strided_slice %317 {offsets = [0, 32], sizes = [8, 32], strides = [1, 1]} : vector<8x128xf32> to vector<8x32xf32>
    %321 = vector.extract_strided_slice %317 {offsets = [0, 96], sizes = [8, 32], strides = [1, 1]} : vector<8x128xf32> to vector<8x32xf32>
    %322 = vector.extract_strided_slice %318 {offsets = [0, 64], sizes = [8, 32], strides = [1, 1]} : vector<8x128xf32> to vector<8x32xf32>
    %323 = arith.mulf %320, %302 : vector<8x32xf32>
    %324 = arith.mulf %319, %322 : vector<8x32xf32>
    %325 = arith.addf %323, %324 : vector<8x32xf32>
    %326 = math.tanh %325 : vector<8x32xf32>
    %327 = arith.mulf %321, %326 : vector<8x32xf32>
    %cst_72 = arith.constant dense<0.000000e+00> : vector<8x128xf32>
    %328 = tpu.matmul %327, %4, %cst_72 {dimension_numbers = #tpu.dot_dimension_numbers<[1], [0], [0], [1], [0, 0, 1, 1], [], []>} : vector<8x32xf32>, vector<32x128xf32>, vector<8x128xf32> -> vector<8x128xf32>
    %329 = vector.broadcast %5 : vector<1x128xf32> to vector<8x128xf32>
    %330 = arith.addf %328, %329 : vector<8x128xf32>
    %c6 = arith.constant 6 : index
    %c0_73 = arith.constant 0 : index
    %c0_74 = arith.constant 0 : index
    %331 = vector.load %arg9[%c6, %c0_73, %c0_74] : memref<8x8x128xf32, #tpu.memory_space<vmem>>, vector<1x8x128xf32>
    %332 = vector.shape_cast %331 : vector<1x8x128xf32> to vector<8x128xf32>
    %333 = vector.shape_cast %330 : vector<8x128xf32> to vector<1x8x128xf32>
    tpu.vector_store %arg9[%c6, %c0_73, %c0_74], %333 {strides = array<i32>} : memref<8x8x128xf32, #tpu.memory_space<vmem>>, vector<1x8x128xf32>,
    %cst_75 = arith.constant dense<0.000000e+00> : vector<8x128xf32>
    %334 = tpu.matmul %327, %1, %cst_75 {dimension_numbers = #tpu.dot_dimension_numbers<[1], [0], [0], [1], [0, 0, 1, 1], [], []>} : vector<8x32xf32>, vector<32x128xf32>, vector<8x128xf32> -> vector<8x128xf32>
    %335 = arith.addf %170, %334 : vector<8x128xf32>
    %336 = arith.negf %335 : vector<8x128xf32>
    %337 = math.exp %336 : vector<8x128xf32>
    %cst_76 = arith.constant 1.000000e+00 : f32
    %338 = vector.broadcast %cst_76 : f32 to vector<8x128xf32>
    %339 = arith.addf %338, %337 : vector<8x128xf32>
    %340 = arith.divf %338, %339 : vector<8x128xf32>
    %341 = math.tanh %335 : vector<8x128xf32>
    %342 = vector.extract_strided_slice %340 {offsets = [0, 0], sizes = [8, 32], strides = [1, 1]} : vector<8x128xf32> to vector<8x32xf32>
    %343 = vector.extract_strided_slice %340 {offsets = [0, 32], sizes = [8, 32], strides = [1, 1]} : vector<8x128xf32> to vector<8x32xf32>
    %344 = vector.extract_strided_slice %340 {offsets = [0, 96], sizes = [8, 32], strides = [1, 1]} : vector<8x128xf32> to vector<8x32xf32>
    %345 = vector.extract_strided_slice %341 {offsets = [0, 64], sizes = [8, 32], strides = [1, 1]} : vector<8x128xf32> to vector<8x32xf32>
    %346 = arith.mulf %343, %325 : vector<8x32xf32>
    %347 = arith.mulf %342, %345 : vector<8x32xf32>
    %348 = arith.addf %346, %347 : vector<8x32xf32>
    %349 = math.tanh %348 : vector<8x32xf32>
    %350 = arith.mulf %344, %349 : vector<8x32xf32>
    %cst_77 = arith.constant dense<0.000000e+00> : vector<8x128xf32>
    %351 = tpu.matmul %350, %4, %cst_77 {dimension_numbers = #tpu.dot_dimension_numbers<[1], [0], [0], [1], [0, 0, 1, 1], [], []>} : vector<8x32xf32>, vector<32x128xf32>, vector<8x128xf32> -> vector<8x128xf32>
    %352 = vector.broadcast %5 : vector<1x128xf32> to vector<8x128xf32>
    %353 = arith.addf %351, %352 : vector<8x128xf32>
    %c7 = arith.constant 7 : index
    %c0_78 = arith.constant 0 : index
    %c0_79 = arith.constant 0 : index
    %354 = vector.load %arg9[%c7, %c0_78, %c0_79] : memref<8x8x128xf32, #tpu.memory_space<vmem>>, vector<1x8x128xf32>
    %355 = vector.shape_cast %354 : vector<1x8x128xf32> to vector<8x128xf32>
    %356 = vector.shape_cast %353 : vector<8x128xf32> to vector<1x8x128xf32>
    tpu.vector_store %arg9[%c7, %c0_78, %c0_79], %356 {strides = array<i32>} : memref<8x8x128xf32, #tpu.memory_space<vmem>>, vector<1x8x128xf32>,
    return
  }
}

</mosaic_0001>

<bundles_post_ra>
// kernel: lstm_ae_forward.1
= control target key start
LH: loop header
LB: loop body
LE: loop exit
PB: predicated region body
PF: predicated region fallthrough
CT: control target
= control target key end

     0   :  { %vm87_vm0 = vcmask 1043456   ;;  %vm62_vm1 = vcmask 31744   ;;  %v3229_v0 = vmov 0.0|0.0   ;;  %vm3230_vm2 = vmmov 0   ;;  %s3232_s23 = smov 64   ;;  %s3693_s2 = inlined_call_operand.vmem [shape: f32[32,128], index: 2, kind: input, shape index: {}]   ;;  %s3694_s1 = inlined_call_operand.vmem [shape: f32[4,128], index: 1, kind: input, shape index: {}]   ;;  %s3695_s0 = inlined_call_operand.vmem [shape: f32[8,8,4], index: 0, kind: input, shape index: {}]   ;;  %s3696_s3 = inlined_call_operand.vmem [shape: f32[1,128], index: 3, kind: input, shape index: {}]   ;;  %s3697_s4 = inlined_call_operand.vmem [shape: f32[32,128], index: 4, kind: input, shape index: {}]   ;;  %s3698_s5 = inlined_call_operand.vmem [shape: f32[32,128], index: 5, kind: input, shape index: {}]   ;;  %s3699_s6 = inlined_call_operand.vmem [shape: f32[1,128], index: 6, kind: input, shape index: {}]   ;;  %s3700_s7 = inlined_call_operand.vmem [shape: f32[32,128], index: 7, kind: input, shape index: {}]   ;;  %s3701_s8 = inlined_call_operand.vmem [shape: f32[1,128], index: 8, kind: input, shape index: {}]   ;;  %s3702_s9 = inlined_call_operand.vmem [shape: f32[8,8,128], index: 9, kind: output, shape index: {}]  }
   0x1   :  { %2946 = vmatprep.subr.bf16.mxu1 %v3229_v0  ;;  %v32_v1 = vld [vmem:[%s3693_s2] sm:$0xff]  ;;  %v33_v2 = vld [vmem:[%s3693_s2 + $0x8] sm:$0xff]  ;;  %v34_v7 = vld [vmem:[%s3693_s2 + $0x10] sm:$0xff]  ;;  %v3231_v8 = vmov 0.0   ;;  %vm196_vm3 = vcmask 261120  }
   0x2   :  { %v55_v3 = vld [vmem:[%s3694_s1] sm:$0xf]  ;;  %v3294_v4 = vpack.c.bf16 %v33_v2, %v32_v1  ;;  %v48_v6 = vld [vmem:[%s3695_s0 + $0x8] sm:$0xff]  ;;  %2679 = vmatprep.mubr.msk.f32.mxu1 %vm3230_vm2, %v3231_v8  ;;  %v35_v9 = vld [vmem:[%s3693_s2 + $0x18] sm:$0xff] }
   0x3   :  { %2657 = vmatprep.subr.msk.mxu0 %vm87_vm0, %v55_v3  ;;  %v47_v5 = vld [vmem:[%s3695_s0] sm:$0xff]  ;;  %v3315_v10 = vpack.c.bf16 %v35_v9, %v34_v7  ;;  %v49_v46 = vld [vmem:[%s3695_s0 + $0x10] sm:$0xff]  ;;  %v50_v47 = vld [vmem:[%s3695_s0 + $0x18] sm:$0xff] }
   0x4   :  { %2658 = vmatpush3.msk.msra.mxu0 %vm87_vm0, %v55_v3  ;;  %2659 = vmatprep.mubr.msk.f32.mxu0 %vm62_vm1, %v47_v5  ;;  %v3335_v12 = vld [vmem:[%s3696_s3] ss:$0 sm:$0xff]  ;;  %s3233_s3 = smov 32   ;;  %v52_v49 = vld [vmem:[%s3695_s0 + $0x28] sm:$0xff]  ;;  %v53_v50 = vld [vmem:[%s3695_s0 + $0x30] sm:$0xff] }
   0x5   :  { %2948 = vmatpush3.bf16.msra.mxu1 %v3294_v4  ;;  %2660 = vmatmul.mubr.msk.f32.vlgmr.msra.gmra.mrb[0].mxu0 %vm62_vm1, %v48_v6  ;;  %v51_v48 = vld [vmem:[%s3695_s0 + $0x20] sm:$0xff]  ;;  %v54_v51 = vld [vmem:[%s3695_s0 + $0x38] sm:$0xff] }
   0x6   :  { %2949 = vmatprep.subr.bf16.mxu1 %v3229_v0  ;;  %2958 = vmatprep.subr.bf16.mxu0 %v3229_v0 }
   0x7   :  { %2960 = vmatpush3.bf16.msra.mxu0 %v3294_v4  ;;  %2662 = vmatprep.mubr.msk.f32.mxu0 %vm62_vm1, %v49_v46 }
   0x8   :  { %2961 = vmatprep.subr.bf16.mxu0 %v3229_v0 }
   0x9   :  { %2951 = vmatpush3.bf16.msra.mxu1 %v3315_v10  ;;  %2663 = vmatmul.mubr.msk.f32.gmra.mrb[2].mxu0 %vm62_vm1, %v50_v47 }
   0xa   :  { %2952 = vmatprep.subr.bf16.mxu1 %v3229_v0  ;;  %2665 = vmatprep.mubr.msk.f32.mxu0 %vm62_vm1, %v51_v48 }
   0xb   :  { %2963 = vmatpush3.bf16.msra.mxu0 %v3315_v10 }
   0xc   :  { %2680 = vmatmul.mubr.f32.vlgmr.msra.gmra.mrb[0].mxu1 %v3231_v8  ;;  %2970 = vmatprep.subr.bf16.mxu0 %v3229_v0 }
   0xd   :  { %2954 = vmatpush3.bf16.msra.mxu1 %v3294_v4  ;;  %2690 = vmatprep.mubr.msk.f32.mxu1 %vm3230_vm2, %v3231_v8 }
   0xe   :  { %2955 = vmatprep.subr.bf16.mxu1 %v3229_v0  ;;  %2666 = vmatmul.mubr.msk.f32.gmra.mrb[4].mxu0 %vm62_vm1, %v52_v49 }
   0xf   :  { %2668 = vmatprep.mubr.msk.f32.mxu0 %vm62_vm1, %v53_v50 }
  0x11   :  { %2957 = vmatpush3.bf16.msra.mxu1 %v3315_v10 }
  0x12   :  { %2964 = vmatprep.subr.bf16.mxu1 %v3229_v0  ;;  %2669 = vmatmul.mubr.msk.f32.gmra.mrb[6].mxu0 %vm62_vm1, %v54_v51 }
  0x13   :  { %2701 = vmatprep.mubr.msk.f32.mxu0 %vm3230_vm2, %v3231_v8 }
  0xd8   :  { %v2661_v11 = vpop.f32.mrb[0].mxu0 }
  0xd9   :  { %v157_v13 = vpop.f32.mrb[1].mxu0  ;;  %v163_v32 = vadd.f32 %v2661_v11, %v3335_v12 }
  0xda   :  { %v158_v14 = vadd.f32 %v3335_v12, %v157_v13 }
  0xdc   :  { %v2664_v55 = vpop.f32.mrb[2].mxu0 }
  0xdd   :  { %v167_v56 = vpop.f32.mrb[3].mxu0 }
  0xde   :  { %v168_v62 = vadd.f32 %v3335_v12, %v167_v56 }
  0xdf   :  { %v266_v15 = vpop.f32.mrb[0].mxu1 }
  0xe0   :  { %v270_v16 = vadd.f32 %v266_v15, %v158_v14  ;;  %v2681_v17 = vpop.f32.mrb[1].mxu1 }
  0xe1   :  { %v3380_v57 = vpop.f32.mrb[4].mxu0 }
  0xe2   :  { %3101 = vtanh.f32 %v270_v16  ;;  %v2475_v19 = vmul.f32 -1.442695, %v270_v16  ;;  %v3382_v58 = vpop.f32.mrb[5].mxu0 }
  0xe4   :  { %3103 = vpow2.f32 %v2475_v19 }
  0xe5   :  { %v3384_v59 = vpop.f32.mrb[6].mxu0 }
  0xe6   :  { %v3386_v60 = vpop.f32.mrb[7].mxu0 }
  0xec   :  { %v3102_v18 = vpop.eup %3101 }
  0xed   :  { %280 = vrot.lane.b32.xlu0 %v3102_v18, %s3232_s23 }
  0xee   :  { %v3104_v20 = vpop.eup %3103 }
  0xef   :  { %v274_v21 = vadd.f32 1.0, %v3104_v20 }
  0xf1   :  { %3105 = vrcp.f32 %v274_v21  ;;  %v173_v21 = vadd.f32 %v2664_v55, %v3335_v12 }
  0xfb   :  { %v3106_v22 = vpop.eup %3105 }
  0xfc   :  { %v278_v25 = vmul.f32 0.0, %v3106_v22 }
 0x15f   :  { %v281_v23 = vpop.permute.xlu0 %280 }
 0x160   :  { %v283_v24 = vmul.f32 %v3106_v22, %v281_v23 }
 0x162   :  { %285 = vrot.lane.b32.xlu0 %v283_v24, %s3233_s3 }
 0x1d4   :  { %v286_v26 = vpop.permute.xlu0 %285 }
 0x1d5   :  { %v288_v27 = vadd.f32 %v286_v26, %v278_v25 }
 0x1d7   :  { %3107 = vtanh.f32 %v288_v27 }
 0x1e1   :  { %v3108_v28 = vpop.eup %3107 }
 0x1e2   :  { %291 = vrot.lane.b32.xlu1 %v3108_v28, %s3232_s23 }
 0x254   :  { %v292_v29 = vpop.permute.xlu1 %291 }
 0x255   :  { %v294_v30 = vmul.f32 %v3106_v22, %v292_v29 }
 0x257   :  { %296 = vrot.lane.b32.xlu1 %v294_v30, %s3233_s3 }
 0x2c9   :  { %v297_v31 = vpop.permute.xlu1 %296 }
 0x2ca   :  { %2691 = vmatmul.mubr.msk.f32.vlgmr.msra.gmra.mrb[2].mxu1 %vm196_vm3, %v297_v31 }
 0x2cb   :  { %2966 = vmatpush3.bf16.msra.mxu1 %v3294_v4  ;;  %2712 = vmatprep.mubr.msk.f32.mxu1 %vm3230_vm2, %v3231_v8 }
 0x2cc   :  { %2967 = vmatprep.subr.bf16.mxu1 %v3229_v0 }
 0x2cf   :  { %2969 = vmatpush3.bf16.msra.mxu1 %v3315_v10 }
 0x2d0   :  { %2976 = vmatprep.subr.bf16.mxu1 %v3229_v0 }
 0x39d   :  { %v366_v33 = vpop.f32.mrb[2].mxu1 }
 0x39e   :  { %v370_v34 = vadd.f32 %v366_v33, %v163_v32  ;;  %v2692_v35 = vpop.f32.mrb[3].mxu1 }
 0x3a0   :  { %3109 = vtanh.f32 %v370_v34  ;;  %v2477_v37 = vmul.f32 -1.442695, %v370_v34 }
 0x3a2   :  { %3111 = vpow2.f32 %v2477_v37 }
 0x3aa   :  { %v3110_v36 = vpop.eup %3109 }
 0x3ab   :  { %380 = vrot.lane.b32.xlu0 %v3110_v36, %s3232_s23 }
 0x3ac   :  { %v3112_v38 = vpop.eup %3111 }
 0x3ad   :  { %v374_v39 = vadd.f32 1.0, %v3112_v38 }
 0x3af   :  { %3113 = vrcp.f32 %v374_v39  ;;  %v178_v39 = vadd.f32 %v3335_v12, %v3382_v58  ;;  %v183_v58 = vadd.f32 %v3380_v57, %v3335_v12 }
 0x3b9   :  { %v3114_v40 = vpop.eup %3113 }
 0x3ba   :  { %v378_v43 = vmul.f32 %v3114_v40, %v288_v27 }
 0x41d   :  { %v381_v41 = vpop.permute.xlu0 %380 }
 0x41e   :  { %v383_v42 = vmul.f32 %v3114_v40, %v381_v41 }
 0x420   :  { %385 = vrot.lane.b32.xlu1 %v383_v42, %s3233_s3 }
 0x492   :  { %v386_v44 = vpop.permute.xlu1 %385 }
 0x493   :  { %v388_v45 = vadd.f32 %v386_v44, %v378_v43 }
 0x495   :  { %3115 = vtanh.f32 %v388_v45 }
 0x49f   :  { %v3116_v52 = vpop.eup %3115 }
 0x4a0   :  { %391 = vrot.lane.b32.xlu0 %v3116_v52, %s3232_s23 }
 0x512   :  { %v392_v53 = vpop.permute.xlu0 %391 }
 0x513   :  { %v394_v54 = vmul.f32 %v3114_v40, %v392_v53 }
 0x515   :  { %396 = vrot.lane.b32.xlu1 %v394_v54, %s3233_s3 }
 0x587   :  { %v397_v61 = vpop.permute.xlu1 %396 }
 0x588   :  { %2702 = vmatmul.mubr.msk.f32.vlgmr.msra.gmra.mrb[8].mxu0 %vm196_vm3, %v397_v61 }
 0x589   :  { %2972 = vmatpush3.bf16.msra.mxu0 %v3294_v4  ;;  %2723 = vmatprep.mubr.msk.f32.mxu0 %vm3230_vm2, %v3231_v8 }
 0x58a   :  { %2973 = vmatprep.subr.bf16.mxu0 %v3229_v0 }
 0x58d   :  { %2975 = vmatpush3.bf16.msra.mxu0 %v3315_v10 }
 0x58e   :  { %2982 = vmatprep.subr.bf16.mxu0 %v3229_v0 }
 0x65b   :  { %v466_v63 = vpop.f32.mrb[8].mxu0 }
 0x65c   :  { %v470_v1 = vadd.f32 %v466_v63, %v168_v62  ;;  %v2703_v2 = vpop.f32.mrb[9].mxu0 }
 0x65e   :  { %3117 = vtanh.f32 %v470_v1  ;;  %v2479_v5 = vmul.f32 -1.442695, %v470_v1 }
 0x660   :  { %3119 = vpow2.f32 %v2479_v5 }
 0x668   :  { %v3118_v3 = vpop.eup %3117 }
 0x669   :  { %480 = vrot.lane.b32.xlu0 %v3118_v3, %s3232_s23 }
 0x66a   :  { %v3120_v6 = vpop.eup %3119 }
 0x66b   :  { %v474_v7 = vadd.f32 1.0, %v3120_v6 }
 0x66d   :  { %3121 = vrcp.f32 %v474_v7 }
 0x677   :  { %v3122_v9 = vpop.eup %3121 }
 0x678   :  { %v478_v14 = vmul.f32 %v3122_v9, %v388_v45 }
 0x6db   :  { %v481_v11 = vpop.permute.xlu0 %480 }
 0x6dc   :  { %v483_v13 = vmul.f32 %v3122_v9, %v481_v11 }
 0x6de   :  { %485 = vrot.lane.b32.xlu1 %v483_v13, %s3233_s3 }
 0x750   :  { %v486_v15 = vpop.permute.xlu1 %485 }
 0x751   :  { %v488_v16 = vadd.f32 %v486_v15, %v478_v14 }
 0x753   :  { %3123 = vtanh.f32 %v488_v16 }
 0x75d   :  { %v3124_v17 = vpop.eup %3123 }
 0x75e   :  { %491 = vrot.lane.b32.xlu0 %v3124_v17, %s3232_s23 }
 0x7d0   :  { %v492_v18 = vpop.permute.xlu0 %491 }
 0x7d1   :  { %v494_v19 = vmul.f32 %v3122_v9, %v492_v18 }
 0x7d3   :  { %496 = vrot.lane.b32.xlu1 %v494_v19, %s3233_s3 }
 0x845   :  { %v497_v20 = vpop.permute.xlu1 %496 }
 0x846   :  { %2713 = vmatmul.mubr.msk.f32.vlgmr.msra.gmra.mrb[4].mxu1 %vm196_vm3, %v497_v20 }
 0x847   :  { %2978 = vmatpush3.bf16.msra.mxu1 %v3294_v4  ;;  %2734 = vmatprep.mubr.msk.f32.mxu1 %vm3230_vm2, %v3231_v8 }
 0x848   :  { %2979 = vmatprep.subr.bf16.mxu1 %v3229_v0 }
 0x84b   :  { %2981 = vmatpush3.bf16.msra.mxu1 %v3315_v10 }
 0x84c   :  { %2988 = vmatprep.subr.bf16.mxu1 %v3229_v0 }
 0x919   :  { %v566_v22 = vpop.f32.mrb[4].mxu1 }
 0x91a   :  { %v570_v23 = vadd.f32 %v566_v22, %v173_v21  ;;  %v2714_v24 = vpop.f32.mrb[5].mxu1 }
 0x91c   :  { %3125 = vtanh.f32 %v570_v23  ;;  %v2481_v26 = vmul.f32 -1.442695, %v570_v23 }
 0x91e   :  { %3127 = vpow2.f32 %v2481_v26 }
 0x926   :  { %v3126_v25 = vpop.eup %3125 }
 0x927   :  { %580 = vrot.lane.b32.xlu0 %v3126_v25, %s3232_s23 }
 0x928   :  { %v3128_v27 = vpop.eup %3127 }
 0x929   :  { %v574_v28 = vadd.f32 1.0, %v3128_v27 }
 0x92b   :  { %3129 = vrcp.f32 %v574_v28 }
 0x935   :  { %v3130_v29 = vpop.eup %3129 }
 0x936   :  { %v578_v32 = vmul.f32 %v3130_v29, %v488_v16  ;;  %v188_v16 = vadd.f32 %v3335_v12, %v3386_v60 }
 0x999   :  { %v581_v30 = vpop.permute.xlu0 %580 }
 0x99a   :  { %v583_v31 = vmul.f32 %v3130_v29, %v581_v30 }
 0x99c   :  { %585 = vrot.lane.b32.xlu1 %v583_v31, %s3233_s3 }
 0xa0e   :  { %v586_v33 = vpop.permute.xlu1 %585 }
 0xa0f   :  { %v588_v34 = vadd.f32 %v586_v33, %v578_v32  ;;  %v193_v33 = vadd.f32 %v3384_v59, %v3335_v12  ;;  %v995_v59 = vld [vmem:[%s3697_s4] sm:$0xff] }
 0xa11   :  { %3131 = vtanh.f32 %v588_v34 }
 0xa1b   :  { %v3132_v35 = vpop.eup %3131 }
 0xa1c   :  { %591 = vrot.lane.b32.xlu0 %v3132_v35, %s3232_s23 }
 0xa8e   :  { %v592_v36 = vpop.permute.xlu0 %591 }
 0xa8f   :  { %v594_v37 = vmul.f32 %v3130_v29, %v592_v36 }
 0xa91   :  { %596 = vrot.lane.b32.xlu1 %v594_v37, %s3233_s3 }
 0xb03   :  { %v597_v38 = vpop.permute.xlu1 %596 }
 0xb04   :  { %2724 = vmatmul.mubr.msk.f32.vlgmr.msra.gmra.mrb[10].mxu0 %vm196_vm3, %v597_v38 }
 0xb05   :  { %2984 = vmatpush3.bf16.msra.mxu0 %v3294_v4  ;;  %2745 = vmatprep.mubr.msk.f32.mxu0 %vm3230_vm2, %v3231_v8 }
 0xb06   :  { %2985 = vmatprep.subr.bf16.mxu0 %v3229_v0 }
 0xb09   :  { %2987 = vmatpush3.bf16.msra.mxu0 %v3315_v10 }
 0xb0a   :  { %2994 = vmatprep.subr.bf16.mxu0 %v3229_v0 }
 0xbd7   :  { %v666_v40 = vpop.f32.mrb[10].mxu0 }
 0xbd8   :  { %v670_v41 = vadd.f32 %v666_v40, %v178_v39  ;;  %v2725_v42 = vpop.f32.mrb[11].mxu0 }
 0xbda   :  { %3133 = vtanh.f32 %v670_v41  ;;  %v2483_v44 = vmul.f32 -1.442695, %v670_v41 }
 0xbdc   :  { %3135 = vpow2.f32 %v2483_v44 }
 0xbe4   :  { %v3134_v43 = vpop.eup %3133 }
 0xbe5   :  { %680 = vrot.lane.b32.xlu0 %v3134_v43, %s3232_s23 }
 0xbe6   :  { %v3136_v45 = vpop.eup %3135 }
 0xbe7   :  { %v674_v46 = vadd.f32 1.0, %v3136_v45 }
 0xbe9   :  { %3137 = vrcp.f32 %v674_v46  ;;  %v996_v46 = vld [vmem:[%s3697_s4 + $0x8] sm:$0xff] }
 0xbf3   :  { %v3138_v47 = vpop.eup %3137 }
 0xbf4   :  { %v678_v50 = vmul.f32 %v3138_v47, %v588_v34 }
 0xc57   :  { %v681_v48 = vpop.permute.xlu0 %680 }
 0xc58   :  { %v683_v49 = vmul.f32 %v3138_v47, %v681_v48  ;;  %v2995_v48 = vpack.c.bf16 %v996_v46, %v995_v59 }
 0xc5a   :  { %685 = vrot.lane.b32.xlu1 %v683_v49, %s3233_s3  ;;  %v37_v49 = vld [vmem:[%s3698_s5 + $0x8] sm:$0xff] }
 0xccc   :  { %v686_v51 = vpop.permute.xlu1 %685 }
 0xccd   :  { %v688_v52 = vadd.f32 %v686_v51, %v678_v50  ;;  %v997_v50 = vld [vmem:[%s3697_s4 + $0x10] sm:$0xff]  ;;  %v998_v51 = vld [vmem:[%s3697_s4 + $0x18] sm:$0xff] }
 0xccf   :  { %3139 = vtanh.f32 %v688_v52 }
 0xcd9   :  { %v3140_v53 = vpop.eup %3139 }
 0xcda   :  { %691 = vrot.lane.b32.xlu0 %v3140_v53, %s3232_s23  ;;  %v38_v53 = vld [vmem:[%s3698_s5 + $0x10] sm:$0xff] }
 0xd4c   :  { %v692_v54 = vpop.permute.xlu0 %691 }
 0xd4d   :  { %v694_v55 = vmul.f32 %v3138_v47, %v692_v54  ;;  %v36_v47 = vld [vmem:[%s3698_s5] sm:$0xff]  ;;  %v39_v54 = vld [vmem:[%s3698_s5 + $0x18] sm:$0xff] }
 0xd4f   :  { %696 = vrot.lane.b32.xlu1 %v694_v55, %s3233_s3  ;;  %v2998_v55 = vpack.c.bf16 %v998_v51, %v997_v50 }
 0xdc1   :  { %v697_v56 = vpop.permute.xlu1 %696 }
 0xdc2   :  { %2735 = vmatmul.mubr.msk.f32.vlgmr.msra.gmra.mrb[6].mxu1 %vm196_vm3, %v697_v56  ;;  %v3482_v56 = vpack.c.bf16 %v39_v54, %v38_v53 }
 0xdc3   :  { %2990 = vmatpush3.bf16.msra.mxu1 %v3294_v4  ;;  %2756 = vmatprep.mubr.msk.f32.mxu1 %vm3230_vm2, %v3231_v8 }
 0xdc4   :  { %2991 = vmatprep.subr.bf16.mxu1 %v3229_v0 }
 0xdc7   :  { %2993 = vmatpush3.bf16.msra.mxu1 %v3315_v10 }
 0xdc8   :  { %3000 = vmatprep.subr.bf16.mxu1 %v3229_v0 }
 0xe95   :  { %v766_v61 = vpop.f32.mrb[6].mxu1 }
 0xe96   :  { %v770_v62 = vadd.f32 %v766_v61, %v183_v58  ;;  %v2736_v63 = vpop.f32.mrb[7].mxu1 }
 0xe98   :  { %3141 = vtanh.f32 %v770_v62  ;;  %v2485_v4 = vmul.f32 -1.442695, %v770_v62 }
 0xe9a   :  { %3143 = vpow2.f32 %v2485_v4 }
 0xea2   :  { %v3142_v1 = vpop.eup %3141 }
 0xea3   :  { %780 = vrot.lane.b32.xlu0 %v3142_v1, %s3232_s23 }
 0xea4   :  { %v3144_v2 = vpop.eup %3143 }
 0xea5   :  { %v774_v3 = vadd.f32 1.0, %v3144_v2  ;;  %v2490_v2 = vld [vmem:[%s3699_s6] ss:$0 sm:$0xff] }
 0xea7   :  { %3145 = vrcp.f32 %v774_v3 }
 0xeb1   :  { %v3146_v5 = vpop.eup %3145 }
 0xeb2   :  { %v778_v7 = vmul.f32 %v3146_v5, %v688_v52  ;;  %v3472_v52 = vpack.c.bf16 %v37_v49, %v36_v47 }
 0xf15   :  { %v781_v6 = vpop.permute.xlu0 %780 }
 0xf16   :  { %v783_v10 = vmul.f32 %v3146_v5, %v781_v6 }
 0xf18   :  { %785 = vrot.lane.b32.xlu1 %v783_v10, %s3233_s3 }
 0xf8a   :  { %v786_v9 = vpop.permute.xlu1 %785 }
 0xf8b   :  { %v788_v57 = vadd.f32 %v786_v9, %v778_v7 }
 0xf8d   :  { %3147 = vtanh.f32 %v788_v57 }
 0xf97   :  { %v3148_v11 = vpop.eup %3147 }
 0xf98   :  { %791 = vrot.lane.b32.xlu0 %v3148_v11, %s3232_s23 }
0x100a   :  { %v792_v13 = vpop.permute.xlu0 %791 }
0x100b   :  { %v794_v14 = vmul.f32 %v3146_v5, %v792_v13 }
0x100d   :  { %796 = vrot.lane.b32.xlu1 %v794_v14, %s3233_s3 }
0x107f   :  { %v797_v15 = vpop.permute.xlu1 %796 }
0x1080   :  { %2746 = vmatmul.mubr.msk.f32.vlgmr.msra.gmra.mrb[12].mxu0 %vm196_vm3, %v797_v15 }
0x1081   :  { %2767 = vmatprep.mubr.msk.f32.mxu0 %vm3230_vm2, %v3231_v8  ;;  %2996 = vmatpush3.bf16.msra.mxu0 %v2995_v48 }
0x1082   :  { %2997 = vmatprep.subr.bf16.mxu0 %v3229_v0 }
0x1085   :  { %2999 = vmatpush3.bf16.msra.mxu0 %v2998_v55 }
0x1086   :  { %3006 = vmatprep.subr.bf16.mxu0 %v3229_v0 }
0x1153   :  { %v866_v17 = vpop.f32.mrb[12].mxu0 }
0x1154   :  { %v870_v18 = vadd.f32 %v866_v17, %v188_v16  ;;  %v2747_v19 = vpop.f32.mrb[13].mxu0 }
0x1155   :  { %v42_v19 = vld [vmem:[%s3700_s7] sm:$0xff] }
0x1156   :  { %3149 = vtanh.f32 %v870_v18  ;;  %v2487_v21 = vmul.f32 -1.442695, %v870_v18 }
0x1158   :  { %3151 = vpow2.f32 %v2487_v21  ;;  %v44_v21 = vld [vmem:[%s3700_s7 + $0x10] sm:$0xff] }
0x1160   :  { %v3150_v20 = vpop.eup %3149 }
0x1161   :  { %880 = vrot.lane.b32.xlu0 %v3150_v20, %s3232_s23  ;;  %v43_v20 = vld [vmem:[%s3700_s7 + $0x8] sm:$0xff] }
0x1162   :  { %v3152_v22 = vpop.eup %3151 }
0x1163   :  { %v874_v23 = vadd.f32 1.0, %v3152_v22  ;;  %v3517_v22 = vpack.c.bf16 %v43_v20, %v42_v19 }
0x1165   :  { %3153 = vrcp.f32 %v874_v23  ;;  %v45_v23 = vld [vmem:[%s3700_s7 + $0x18] sm:$0xff] }
0x116f   :  { %v3154_v24 = vpop.eup %3153 }
0x1170   :  { %v878_v27 = vmul.f32 %v3154_v24, %v788_v57 }
0x11d3   :  { %v881_v25 = vpop.permute.xlu0 %880 }
0x11d4   :  { %v883_v26 = vmul.f32 %v3154_v24, %v881_v25 }
0x11d6   :  { %885 = vrot.lane.b32.xlu1 %v883_v26, %s3233_s3 }
0x1248   :  { %v886_v28 = vpop.permute.xlu1 %885 }
0x1249   :  { %v888_v60 = vadd.f32 %v886_v28, %v878_v27 }
0x124b   :  { %3155 = vtanh.f32 %v888_v60 }
0x1255   :  { %v3156_v29 = vpop.eup %3155 }
0x1256   :  { %891 = vrot.lane.b32.xlu0 %v3156_v29, %s3232_s23 }
0x12c8   :  { %v892_v30 = vpop.permute.xlu0 %891 }
0x12c9   :  { %v894_v31 = vmul.f32 %v3154_v24, %v892_v30  ;;  %v3523_v24 = vpack.c.bf16 %v45_v23, %v44_v21 }
0x12cb   :  { %896 = vrot.lane.b32.xlu1 %v894_v31, %s3233_s3 }
0x133d   :  { %v897_v32 = vpop.permute.xlu1 %896 }
0x133e   :  { %2757 = vmatmul.mubr.msk.f32.vlgmr.msra.gmra.mrb[8].mxu1 %vm196_vm3, %v897_v32 }
0x133f   :  { %2778 = vmatprep.mubr.msk.f32.mxu1 %vm3230_vm2, %v3231_v8  ;;  %3002 = vmatpush3.bf16.msra.mxu1 %v3472_v52 }
0x1340   :  { %3003 = vmatprep.subr.bf16.mxu1 %v3229_v0 }
0x1343   :  { %3005 = vmatpush3.bf16.msra.mxu1 %v3482_v56 }
0x1344   :  { %3012 = vmatprep.subr.bf16.mxu1 %v3229_v0 }
0x1346   :  { %2779 = vmatmul.mubr.f32.vlgmr.msra.gmra.mrb[10].mxu1 %v3231_v8 }
0x1347   :  { %3014 = vmatpush3.bf16.msra.mxu1 %v3472_v52  ;;  %2800 = vmatprep.mubr.msk.f32.mxu1 %vm3230_vm2, %v3231_v8 }
0x1348   :  { %3015 = vmatprep.subr.bf16.mxu1 %v3229_v0 }
0x134b   :  { %3017 = vmatpush3.bf16.msra.mxu1 %v3482_v56 }
0x134c   :  { %3024 = vmatprep.subr.bf16.mxu1 %v3229_v0 }
0x1411   :  { %v966_v34 = vpop.f32.mrb[8].mxu1 }
0x1412   :  { %v970_v35 = vadd.f32 %v966_v34, %v193_v33  ;;  %v2758_v36 = vpop.f32.mrb[9].mxu1 }
0x1414   :  { %3157 = vtanh.f32 %v970_v35  ;;  %v2489_v38 = vmul.f32 -1.442695, %v970_v35 }
0x1416   :  { %3159 = vpow2.f32 %v2489_v38 }
0x1419   :  { %v1146_v1 = vpop.f32.mrb[10].mxu1 }
0x141a   :  { %v2780_v4 = vpop.f32.mrb[11].mxu1 }
0x141e   :  { %v3158_v37 = vpop.eup %3157 }
0x141f   :  { %980 = vrot.lane.b32.xlu0 %v3158_v37, %s3232_s23 }
0x1420   :  { %v3160_v39 = vpop.eup %3159 }
0x1421   :  { %v974_v40 = vadd.f32 1.0, %v3160_v39 }
0x1423   :  { %3161 = vrcp.f32 %v974_v40 }
0x142d   :  { %v3162_v41 = vpop.eup %3161 }
0x142e   :  { %v978_v44 = vmul.f32 %v3162_v41, %v888_v60  ;;  %v3547_v60 = vld [vmem:[%s3701_s8] ss:$0 sm:$0xff] }
0x1491   :  { %v981_v42 = vpop.permute.xlu0 %980 }
0x1492   :  { %v983_v43 = vmul.f32 %v3162_v41, %v981_v42 }
0x1494   :  { %985 = vrot.lane.b32.xlu1 %v983_v43, %s3233_s3 }
0x1506   :  { %v986_v45 = vpop.permute.xlu1 %985 }
0x1507   :  { %v988_v12 = vadd.f32 %v986_v45, %v978_v44 }
0x1509   :  { %3163 = vtanh.f32 %v988_v12 }
0x1513   :  { %v3164_v58 = vpop.eup %3163 }
0x1514   :  { %991 = vrot.lane.b32.xlu0 %v3164_v58, %s3232_s23 }
0x1586   :  { %v992_v61 = vpop.permute.xlu0 %991 }
0x1587   :  { %v994_v62 = vmul.f32 %v3162_v41, %v992_v61 }
0x1589   :  { %1006 = vrot.lane.b32.xlu1 %v994_v62, %s3233_s3 }
0x15fb   :  { %v1007_v63 = vpop.permute.xlu1 %1006 }
0x15fc   :  { %2768 = vmatmul.mubr.msk.f32.vlgmr.msra.gmra.mrb[14].mxu0 %vm196_vm3, %v1007_v63 }
0x15fd   :  { %2789 = vmatprep.mubr.msk.f32.mxu0 %vm3230_vm2, %v3231_v8  ;;  %3008 = vmatpush3.bf16.msra.mxu0 %v3517_v22 }
0x15fe   :  { %3009 = vmatprep.subr.bf16.mxu0 %v3229_v0 }
0x1601   :  { %3011 = vmatpush3.bf16.msra.mxu0 %v3523_v24 }
0x1602   :  { %3018 = vmatprep.subr.bf16.mxu0 %v3229_v0 }
0x16cf   :  { %v1076_v3 = vpop.f32.mrb[14].mxu0 }
0x16d0   :  { %v3503_v5 = vadd.f32 %v2490_v2, %v1076_v3  ;;  %v2769_v6 = vpop.f32.mrb[15].mxu0 }
0x16d2   :  { %v1150_v10 = vadd.f32 %v1146_v1, %v3503_v5 }
0x16d4   :  { %3165 = vtanh.f32 %v1150_v10  ;;  %v2492_v9 = vmul.f32 -1.442695, %v1150_v10 }
0x16d6   :  { %3167 = vpow2.f32 %v2492_v9 }
0x16de   :  { %v3166_v7 = vpop.eup %3165 }
0x16df   :  { %1160 = vrot.lane.b32.xlu0 %v3166_v7, %s3232_s23 }
0x16e0   :  { %v3168_v57 = vpop.eup %3167 }
0x16e1   :  { %v1154_v11 = vadd.f32 1.0, %v3168_v57 }
0x16e3   :  { %3169 = vrcp.f32 %v1154_v11 }
0x16ed   :  { %v3170_v13 = vpop.eup %3169 }
0x16ee   :  { %v1158_v16 = vmul.f32 0.0, %v3170_v13 }
0x1751   :  { %v1161_v14 = vpop.permute.xlu0 %1160 }
0x1752   :  { %v1163_v15 = vmul.f32 %v3170_v13, %v1161_v14 }
0x1754   :  { %1165 = vrot.lane.b32.xlu1 %v1163_v15, %s3233_s3 }
0x17c6   :  { %v1166_v17 = vpop.permute.xlu1 %1165 }
0x17c7   :  { %v1168_v18 = vadd.f32 %v1166_v17, %v1158_v16 }
0x17c9   :  { %3171 = vtanh.f32 %v1168_v18 }
0x17d3   :  { %v3172_v25 = vpop.eup %3171 }
0x17d4   :  { %1171 = vrot.lane.b32.xlu0 %v3172_v25, %s3232_s23 }
0x1846   :  { %v1172_v26 = vpop.permute.xlu0 %1171 }
0x1847   :  { %v1174_v27 = vmul.f32 %v3170_v13, %v1172_v26 }
0x1849   :  { %1182 = vrot.lane.b32.xlu1 %v1174_v27, %s3233_s3 }
0x18bb   :  { %v1183_v28 = vpop.permute.xlu1 %1182 }
0x18bc   :  { %2790 = vmatmul.mubr.msk.f32.vlgmr.msra.gmra.mrb[16].mxu0 %vm196_vm3, %v1183_v28  ;;  %2801 = vmatmul.mubr.msk.f32.vlgmr.msra.gmra.mrb[12].mxu1 %vm196_vm3, %v1183_v28 }
0x18bd   :  { %3020 = vmatpush3.bf16.msra.mxu0 %v3517_v22  ;;  %3026 = vmatpush3.bf16.msra.mxu1 %v3472_v52 }
0x18be   :  { %3021 = vmatprep.subr.bf16.mxu0 %v3229_v0  ;;  %3027 = vmatprep.subr.bf16.mxu1 %v3229_v0 }
0x18bf   :  { %2811 = vmatprep.mubr.msk.f32.mxu0 %vm3230_vm2, %v3231_v8  ;;  %2822 = vmatprep.mubr.msk.f32.mxu1 %vm3230_vm2, %v3231_v8 }
0x18c1   :  { %3023 = vmatpush3.bf16.msra.mxu0 %v3523_v24  ;;  %3029 = vmatpush3.bf16.msra.mxu1 %v3482_v56 }
0x18c2   :  { %3030 = vmatprep.subr.bf16.mxu0 %v3229_v0  ;;  %3036 = vmatprep.subr.bf16.mxu1 %v3229_v0 }
0x198f   :  { %v1252_v29 = vpop.f32.mrb[16].mxu0  ;;  %v1323_v30 = vpop.f32.mrb[12].mxu1 }
0x1990   :  { %v1253_v31 = vadd.f32 %v3547_v60, %v1252_v29  ;;  %v1327_v32 = vadd.f32 %v1323_v30, %v3503_v5  ;;  %v2791_v33 = vpop.f32.mrb[17].mxu0  ;;  %v2802_v34 = vpop.f32.mrb[13].mxu1 }
0x1992   :  { %1256 = vst [vmem:[%s3702_s9] sm:$0xff] %v1253_v31  ;;  %3173 = vtanh.f32 %v1327_v32  ;;  %v2496_v36 = vmul.f32 -1.442695, %v1327_v32 }
0x1994   :  { %3175 = vpow2.f32 %v2496_v36 }
0x199c   :  { %v3174_v35 = vpop.eup %3173 }
0x199d   :  { %1337 = vrot.lane.b32.xlu0 %v3174_v35, %s3232_s23 }
0x199e   :  { %v3176_v37 = vpop.eup %3175 }
0x199f   :  { %v1331_v38 = vadd.f32 1.0, %v3176_v37 }
0x19a1   :  { %3177 = vrcp.f32 %v1331_v38 }
0x19ab   :  { %v3178_v39 = vpop.eup %3177 }
0x19ac   :  { %v1335_v42 = vmul.f32 %v3178_v39, %v1168_v18 }
0x1a0f   :  { %v1338_v40 = vpop.permute.xlu0 %1337 }
0x1a10   :  { %v1340_v41 = vmul.f32 %v3178_v39, %v1338_v40 }
0x1a12   :  { %1342 = vrot.lane.b32.xlu1 %v1340_v41, %s3233_s3 }
0x1a84   :  { %v1343_v43 = vpop.permute.xlu1 %1342 }
0x1a85   :  { %v1345_v44 = vadd.f32 %v1343_v43, %v1335_v42 }
0x1a87   :  { %3179 = vtanh.f32 %v1345_v44 }
0x1a91   :  { %v3180_v45 = vpop.eup %3179 }
0x1a92   :  { %1348 = vrot.lane.b32.xlu0 %v3180_v45, %s3232_s23 }
0x1b04   :  { %v1349_v12 = vpop.permute.xlu0 %1348 }
0x1b05   :  { %v1351_v59 = vmul.f32 %v3178_v39, %v1349_v12 }
0x1b07   :  { %1353 = vrot.lane.b32.xlu1 %v1351_v59, %s3233_s3 }
0x1b79   :  { %v1354_v46 = vpop.permute.xlu1 %1353 }
0x1b7a   :  { %2812 = vmatmul.mubr.msk.f32.vlgmr.msra.gmra.mrb[18].mxu0 %vm196_vm3, %v1354_v46  ;;  %2823 = vmatmul.mubr.msk.f32.vlgmr.msra.gmra.mrb[14].mxu1 %vm196_vm3, %v1354_v46 }
0x1b7b   :  { %3032 = vmatpush3.bf16.msra.mxu0 %v3517_v22  ;;  %3038 = vmatpush3.bf16.msra.mxu1 %v3472_v52 }
0x1b7c   :  { %3033 = vmatprep.subr.bf16.mxu0 %v3229_v0  ;;  %3039 = vmatprep.subr.bf16.mxu1 %v3229_v0 }
0x1b7d   :  { %2833 = vmatprep.mubr.msk.f32.mxu0 %vm3230_vm2, %v3231_v8  ;;  %2844 = vmatprep.mubr.msk.f32.mxu1 %vm3230_vm2, %v3231_v8 }
0x1b7f   :  { %3035 = vmatpush3.bf16.msra.mxu0 %v3523_v24  ;;  %3041 = vmatpush3.bf16.msra.mxu1 %v3482_v56 }
0x1b80   :  { %3042 = vmatprep.subr.bf16.mxu0 %v3229_v0  ;;  %3048 = vmatprep.subr.bf16.mxu1 %v3229_v0 }
0x1c4d   :  { %v1423_v47 = vpop.f32.mrb[18].mxu0  ;;  %v1495_v48 = vpop.f32.mrb[14].mxu1 }
0x1c4e   :  { %v1424_v49 = vadd.f32 %v3547_v60, %v1423_v47  ;;  %v1499_v50 = vadd.f32 %v1495_v48, %v3503_v5  ;;  %v2813_v51 = vpop.f32.mrb[19].mxu0  ;;  %v2824_v53 = vpop.f32.mrb[15].mxu1 }
0x1c50   :  { %2498 = vst [vmem:[%s3702_s9 + $0x8] sm:$0xff] %v1424_v49  ;;  %3181 = vtanh.f32 %v1499_v50  ;;  %v2500_v55 = vmul.f32 -1.442695, %v1499_v50 }
0x1c52   :  { %3183 = vpow2.f32 %v2500_v55 }
0x1c5a   :  { %v3182_v54 = vpop.eup %3181 }
0x1c5b   :  { %1509 = vrot.lane.b32.xlu0 %v3182_v54, %s3232_s23 }
0x1c5c   :  { %v3184_v58 = vpop.eup %3183 }
0x1c5d   :  { %v1503_v61 = vadd.f32 1.0, %v3184_v58 }
0x1c5f   :  { %3185 = vrcp.f32 %v1503_v61 }
0x1c69   :  { %v3186_v62 = vpop.eup %3185 }
0x1c6a   :  { %v1507_v4 = vmul.f32 %v3186_v62, %v1345_v44 }
0x1ccd   :  { %v1510_v63 = vpop.permute.xlu0 %1509 }
0x1cce   :  { %v1512_v1 = vmul.f32 %v3186_v62, %v1510_v63 }
0x1cd0   :  { %1514 = vrot.lane.b32.xlu1 %v1512_v1, %s3233_s3 }
0x1d42   :  { %v1515_v2 = vpop.permute.xlu1 %1514 }
0x1d43   :  { %v1517_v3 = vadd.f32 %v1515_v2, %v1507_v4 }
0x1d45   :  { %3187 = vtanh.f32 %v1517_v3 }
0x1d4f   :  { %v3188_v6 = vpop.eup %3187 }
0x1d50   :  { %1520 = vrot.lane.b32.xlu0 %v3188_v6, %s3232_s23 }
0x1dc2   :  { %v1521_v10 = vpop.permute.xlu0 %1520 }
0x1dc3   :  { %v1523_v7 = vmul.f32 %v3186_v62, %v1521_v10 }
0x1dc5   :  { %1525 = vrot.lane.b32.xlu1 %v1523_v7, %s3233_s3 }
0x1e37   :  { %v1526_v9 = vpop.permute.xlu1 %1525 }
0x1e38   :  { %2834 = vmatmul.mubr.msk.f32.vlgmr.msra.gmra.mrb[20].mxu0 %vm196_vm3, %v1526_v9  ;;  %2845 = vmatmul.mubr.msk.f32.vlgmr.msra.gmra.mrb[16].mxu1 %vm196_vm3, %v1526_v9 }
0x1e39   :  { %3044 = vmatpush3.bf16.msra.mxu0 %v3517_v22  ;;  %3050 = vmatpush3.bf16.msra.mxu1 %v3472_v52 }
0x1e3a   :  { %3045 = vmatprep.subr.bf16.mxu0 %v3229_v0  ;;  %3051 = vmatprep.subr.bf16.mxu1 %v3229_v0 }
0x1e3b   :  { %2855 = vmatprep.mubr.msk.f32.mxu0 %vm3230_vm2, %v3231_v8  ;;  %2866 = vmatprep.mubr.msk.f32.mxu1 %vm3230_vm2, %v3231_v8 }
0x1e3d   :  { %3047 = vmatpush3.bf16.msra.mxu0 %v3523_v24  ;;  %3053 = vmatpush3.bf16.msra.mxu1 %v3482_v56 }
0x1e3e   :  { %3054 = vmatprep.subr.bf16.mxu0 %v3229_v0  ;;  %3060 = vmatprep.subr.bf16.mxu1 %v3229_v0 }
0x1f0b   :  { %v1595_v57 = vpop.f32.mrb[20].mxu0  ;;  %v1667_v11 = vpop.f32.mrb[16].mxu1 }
0x1f0c   :  { %v1596_v13 = vadd.f32 %v3547_v60, %v1595_v57  ;;  %v1671_v14 = vadd.f32 %v1667_v11, %v3503_v5  ;;  %v2835_v15 = vpop.f32.mrb[21].mxu0  ;;  %v2846_v16 = vpop.f32.mrb[17].mxu1 }
0x1f0e   :  { %2502 = vst [vmem:[%s3702_s9 + $0x10] sm:$0xff] %v1596_v13  ;;  %3189 = vtanh.f32 %v1671_v14  ;;  %v2504_v18 = vmul.f32 -1.442695, %v1671_v14 }
0x1f10   :  { %3191 = vpow2.f32 %v2504_v18 }
0x1f18   :  { %v3190_v17 = vpop.eup %3189 }
0x1f19   :  { %1681 = vrot.lane.b32.xlu0 %v3190_v17, %s3232_s23 }
0x1f1a   :  { %v3192_v19 = vpop.eup %3191 }
0x1f1b   :  { %v1675_v20 = vadd.f32 1.0, %v3192_v19 }
0x1f1d   :  { %3193 = vrcp.f32 %v1675_v20 }
0x1f27   :  { %v3194_v21 = vpop.eup %3193 }
0x1f28   :  { %v1679_v26 = vmul.f32 %v3194_v21, %v1517_v3 }
0x1f8b   :  { %v1682_v23 = vpop.permute.xlu0 %1681 }
0x1f8c   :  { %v1684_v25 = vmul.f32 %v3194_v21, %v1682_v23 }
0x1f8e   :  { %1686 = vrot.lane.b32.xlu1 %v1684_v25, %s3233_s3 }
0x2000   :  { %v1687_v27 = vpop.permute.xlu1 %1686 }
0x2001   :  { %v1689_v28 = vadd.f32 %v1687_v27, %v1679_v26 }
0x2003   :  { %3195 = vtanh.f32 %v1689_v28 }
0x200d   :  { %v3196_v29 = vpop.eup %3195 }
0x200e   :  { %1692 = vrot.lane.b32.xlu0 %v3196_v29, %s3232_s23 }
0x2080   :  { %v1693_v30 = vpop.permute.xlu0 %1692 }
0x2081   :  { %v1695_v31 = vmul.f32 %v3194_v21, %v1693_v30 }
0x2083   :  { %1697 = vrot.lane.b32.xlu1 %v1695_v31, %s3233_s3 }
0x20f5   :  { %v1698_v32 = vpop.permute.xlu1 %1697 }
0x20f6   :  { %2856 = vmatmul.mubr.msk.f32.vlgmr.msra.gmra.mrb[22].mxu0 %vm196_vm3, %v1698_v32  ;;  %2867 = vmatmul.mubr.msk.f32.vlgmr.msra.gmra.mrb[18].mxu1 %vm196_vm3, %v1698_v32 }
0x20f7   :  { %3056 = vmatpush3.bf16.msra.mxu0 %v3517_v22  ;;  %3062 = vmatpush3.bf16.msra.mxu1 %v3472_v52 }
0x20f8   :  { %3057 = vmatprep.subr.bf16.mxu0 %v3229_v0  ;;  %3063 = vmatprep.subr.bf16.mxu1 %v3229_v0 }
0x20f9   :  { %2877 = vmatprep.mubr.msk.f32.mxu0 %vm3230_vm2, %v3231_v8  ;;  %2888 = vmatprep.mubr.msk.f32.mxu1 %vm3230_vm2, %v3231_v8 }
0x20fb   :  { %3059 = vmatpush3.bf16.msra.mxu0 %v3523_v24  ;;  %3065 = vmatpush3.bf16.msra.mxu1 %v3482_v56 }
0x20fc   :  { %3066 = vmatprep.subr.bf16.mxu0 %v3229_v0  ;;  %3072 = vmatprep.subr.bf16.mxu1 %v3229_v0 }
0x21c9   :  { %v1767_v33 = vpop.f32.mrb[22].mxu0  ;;  %v1839_v34 = vpop.f32.mrb[18].mxu1 }
0x21ca   :  { %v1768_v35 = vadd.f32 %v3547_v60, %v1767_v33  ;;  %v1843_v36 = vadd.f32 %v1839_v34, %v3503_v5  ;;  %v2857_v37 = vpop.f32.mrb[23].mxu0  ;;  %v2868_v38 = vpop.f32.mrb[19].mxu1 }
0x21cc   :  { %2506 = vst [vmem:[%s3702_s9 + $0x18] sm:$0xff] %v1768_v35  ;;  %3197 = vtanh.f32 %v1843_v36  ;;  %v2508_v40 = vmul.f32 -1.442695, %v1843_v36 }
0x21ce   :  { %3199 = vpow2.f32 %v2508_v40 }
0x21d6   :  { %v3198_v39 = vpop.eup %3197 }
0x21d7   :  { %1853 = vrot.lane.b32.xlu0 %v3198_v39, %s3232_s23 }
0x21d8   :  { %v3200_v41 = vpop.eup %3199 }
0x21d9   :  { %v1847_v42 = vadd.f32 1.0, %v3200_v41 }
0x21db   :  { %3201 = vrcp.f32 %v1847_v42 }
0x21e5   :  { %v3202_v43 = vpop.eup %3201 }
0x21e6   :  { %v1851_v12 = vmul.f32 %v3202_v43, %v1689_v28 }
0x2249   :  { %v1854_v44 = vpop.permute.xlu0 %1853 }
0x224a   :  { %v1856_v45 = vmul.f32 %v3202_v43, %v1854_v44 }
0x224c   :  { %1858 = vrot.lane.b32.xlu1 %v1856_v45, %s3233_s3 }
0x22be   :  { %v1859_v59 = vpop.permute.xlu1 %1858 }
0x22bf   :  { %v1861_v46 = vadd.f32 %v1859_v59, %v1851_v12 }
0x22c1   :  { %3203 = vtanh.f32 %v1861_v46 }
0x22cb   :  { %v3204_v47 = vpop.eup %3203 }
0x22cc   :  { %1864 = vrot.lane.b32.xlu0 %v3204_v47, %s3232_s23 }
0x233e   :  { %v1865_v48 = vpop.permute.xlu0 %1864 }
0x233f   :  { %v1867_v49 = vmul.f32 %v3202_v43, %v1865_v48 }
0x2341   :  { %1869 = vrot.lane.b32.xlu1 %v1867_v49, %s3233_s3 }
0x23b3   :  { %v1870_v50 = vpop.permute.xlu1 %1869 }
0x23b4   :  { %2878 = vmatmul.mubr.msk.f32.vlgmr.msra.gmra.mrb[24].mxu0 %vm196_vm3, %v1870_v50  ;;  %2889 = vmatmul.mubr.msk.f32.vlgmr.msra.gmra.mrb[20].mxu1 %vm196_vm3, %v1870_v50 }
0x23b5   :  { %3068 = vmatpush3.bf16.msra.mxu0 %v3517_v22  ;;  %3074 = vmatpush3.bf16.msra.mxu1 %v3472_v52 }
0x23b6   :  { %3069 = vmatprep.subr.bf16.mxu0 %v3229_v0  ;;  %3075 = vmatprep.subr.bf16.mxu1 %v3229_v0 }
0x23b7   :  { %2899 = vmatprep.mubr.msk.f32.mxu0 %vm3230_vm2, %v3231_v8  ;;  %2910 = vmatprep.mubr.msk.f32.mxu1 %vm3230_vm2, %v3231_v8 }
0x23b9   :  { %3071 = vmatpush3.bf16.msra.mxu0 %v3523_v24  ;;  %3077 = vmatpush3.bf16.msra.mxu1 %v3482_v56 }
0x23ba   :  { %3078 = vmatprep.subr.bf16.mxu0 %v3229_v0  ;;  %3084 = vmatprep.subr.bf16.mxu1 %v3229_v0 }
0x2487   :  { %v1939_v51 = vpop.f32.mrb[24].mxu0  ;;  %v2011_v53 = vpop.f32.mrb[20].mxu1 }
0x2488   :  { %v1940_v54 = vadd.f32 %v3547_v60, %v1939_v51  ;;  %v2015_v55 = vadd.f32 %v2011_v53, %v3503_v5  ;;  %v2879_v58 = vpop.f32.mrb[25].mxu0  ;;  %v2890_v61 = vpop.f32.mrb[21].mxu1 }
0x248a   :  { %2510 = vst [vmem:[%s3702_s9 + $0x20] sm:$0xff] %v1940_v54  ;;  %3205 = vtanh.f32 %v2015_v55  ;;  %v2512_v63 = vmul.f32 -1.442695, %v2015_v55 }
0x248c   :  { %3207 = vpow2.f32 %v2512_v63 }
0x2494   :  { %v3206_v62 = vpop.eup %3205 }
0x2495   :  { %2025 = vrot.lane.b32.xlu0 %v3206_v62, %s3232_s23 }
0x2496   :  { %v3208_v1 = vpop.eup %3207 }
0x2497   :  { %v2019_v4 = vadd.f32 1.0, %v3208_v1 }
0x2499   :  { %3209 = vrcp.f32 %v2019_v4 }
0x24a3   :  { %v3210_v2 = vpop.eup %3209 }
0x24a4   :  { %v2023_v10 = vmul.f32 %v3210_v2, %v1861_v46 }
0x2507   :  { %v2026_v3 = vpop.permute.xlu0 %2025 }
0x2508   :  { %v2028_v6 = vmul.f32 %v3210_v2, %v2026_v3 }
0x250a   :  { %2030 = vrot.lane.b32.xlu1 %v2028_v6, %s3233_s3 }
0x257c   :  { %v2031_v7 = vpop.permute.xlu1 %2030 }
0x257d   :  { %v2033_v9 = vadd.f32 %v2031_v7, %v2023_v10 }
0x257f   :  { %3211 = vtanh.f32 %v2033_v9 }
0x2589   :  { %v3212_v57 = vpop.eup %3211 }
0x258a   :  { %2036 = vrot.lane.b32.xlu0 %v3212_v57, %s3232_s23 }
0x25fc   :  { %v2037_v11 = vpop.permute.xlu0 %2036 }
0x25fd   :  { %v2039_v13 = vmul.f32 %v3210_v2, %v2037_v11 }
0x25ff   :  { %2041 = vrot.lane.b32.xlu1 %v2039_v13, %s3233_s3 }
0x2671   :  { %v2042_v14 = vpop.permute.xlu1 %2041 }
0x2672   :  { %2900 = vmatmul.mubr.msk.f32.vlgmr.msra.gmra.mrb[26].mxu0 %vm196_vm3, %v2042_v14  ;;  %2911 = vmatmul.mubr.msk.f32.vlgmr.msra.gmra.mrb[22].mxu1 %vm196_vm3, %v2042_v14 }
0x2673   :  { %3080 = vmatpush3.bf16.msra.mxu0 %v3517_v22  ;;  %3086 = vmatpush3.bf16.msra.mxu1 %v3472_v52 }
0x2674   :  { %3081 = vmatprep.subr.bf16.mxu0 %v3229_v0  ;;  %3087 = vmatprep.subr.bf16.mxu1 %v3229_v0 }
0x2675   :  { %2921 = vmatprep.mubr.msk.f32.mxu0 %vm3230_vm2, %v3231_v8  ;;  %2932 = vmatprep.mubr.msk.f32.mxu1 %vm3230_vm2, %v3231_v8 }
0x2677   :  { %3083 = vmatpush3.bf16.msra.mxu0 %v3523_v24  ;;  %3089 = vmatpush3.bf16.msra.mxu1 %v3482_v56 }
0x2678   :  { %3090 = vmatprep.subr.bf16.mxu0 %v3229_v0 }
0x2745   :  { %v2111_v15 = vpop.f32.mrb[26].mxu0  ;;  %v2183_v16 = vpop.f32.mrb[22].mxu1 }
0x2746   :  { %v2112_v52 = vadd.f32 %v3547_v60, %v2111_v15  ;;  %v2187_v17 = vadd.f32 %v2183_v16, %v3503_v5  ;;  %v2901_v18 = vpop.f32.mrb[27].mxu0  ;;  %v2912_v19 = vpop.f32.mrb[23].mxu1 }
0x2748   :  { %2514 = vst [vmem:[%s3702_s9 + $0x28] sm:$0xff] %v2112_v52  ;;  %3213 = vtanh.f32 %v2187_v17  ;;  %v2516_v21 = vmul.f32 -1.442695, %v2187_v17 }
0x274a   :  { %3215 = vpow2.f32 %v2516_v21 }
0x2752   :  { %v3214_v20 = vpop.eup %3213 }
0x2753   :  { %2197 = vrot.lane.b32.xlu0 %v3214_v20, %s3232_s23 }
0x2754   :  { %v3216_v56 = vpop.eup %3215 }
0x2755   :  { %v2191_v23 = vadd.f32 1.0, %v3216_v56 }
0x2757   :  { %3217 = vrcp.f32 %v2191_v23 }
0x2761   :  { %v3218_v25 = vpop.eup %3217 }
0x2762   :  { %v2195_v28 = vmul.f32 %v3218_v25, %v2033_v9 }
0x27c5   :  { %v2198_v26 = vpop.permute.xlu0 %2197 }
0x27c6   :  { %v2200_v27 = vmul.f32 %v3218_v25, %v2198_v26 }
0x27c8   :  { %2202 = vrot.lane.b32.xlu1 %v2200_v27, %s3233_s3 }
0x283a   :  { %v2203_v29 = vpop.permute.xlu1 %2202 }
0x283b   :  { %v2205_v30 = vadd.f32 %v2203_v29, %v2195_v28 }
0x283d   :  { %3219 = vtanh.f32 %v2205_v30 }
0x2847   :  { %v3220_v31 = vpop.eup %3219 }
0x2848   :  { %2208 = vrot.lane.b32.xlu0 %v3220_v31, %s3232_s23 }
0x28ba   :  { %v2209_v32 = vpop.permute.xlu0 %2208 }
0x28bb   :  { %v2211_v33 = vmul.f32 %v3218_v25, %v2209_v32 }
0x28bd   :  { %2213 = vrot.lane.b32.xlu1 %v2211_v33, %s3233_s3 }
0x292f   :  { %v2214_v34 = vpop.permute.xlu1 %2213 }
0x2930   :  { %2922 = vmatmul.mubr.msk.f32.vlgmr.msra.gmra.mrb[28].mxu0 %vm196_vm3, %v2214_v34  ;;  %2933 = vmatmul.mubr.msk.f32.vlgmr.msra.gmra.mrb[24].mxu1 %vm196_vm3, %v2214_v34 }
0x2931   :  { %3092 = vmatpush3.bf16.msra.mxu0 %v3517_v22  ;;  %2943 = vmatprep.mubr.msk.f32.mxu0 %vm3230_vm2, %v3231_v8 }
0x2932   :  { %3093 = vmatprep.subr.bf16.mxu0 %v3229_v0 }
0x2935   :  { %3095 = vmatpush3.bf16.msra.mxu0 %v3523_v24 }
0x2a03   :  { %v2283_v35 = vpop.f32.mrb[28].mxu0  ;;  %v2355_v36 = vpop.f32.mrb[24].mxu1 }
0x2a04   :  { %v2284_v37 = vadd.f32 %v3547_v60, %v2283_v35  ;;  %v2359_v38 = vadd.f32 %v2355_v36, %v3503_v5  ;;  %v2923_v39 = vpop.f32.mrb[29].mxu0  ;;  %v2934_v40 = vpop.f32.mrb[25].mxu1 }
0x2a06   :  { %2518 = vst [vmem:[%s3702_s9 + $0x30] sm:$0xff] %v2284_v37  ;;  %3221 = vtanh.f32 %v2359_v38  ;;  %v2520_v8 = vmul.f32 -1.442695, %v2359_v38 }
0x2a08   :  { %3223 = vpow2.f32 %v2520_v8 }
0x2a10   :  { %v3222_v22 = vpop.eup %3221 }
0x2a11   :  { %2369 = vrot.lane.b32.xlu0 %v3222_v22, %s3232_s23 }
0x2a12   :  { %v3224_v0 = vpop.eup %3223 }
0x2a13   :  { %v2363_v24 = vadd.f32 1.0, %v3224_v0 }
0x2a15   :  { %3225 = vrcp.f32 %v2363_v24 }
0x2a1f   :  { %v3226_v41 = vpop.eup %3225 }
0x2a20   :  { %v2367_v5 = vmul.f32 %v3226_v41, %v2205_v30 }
0x2a83   :  { %v2370_v42 = vpop.permute.xlu0 %2369 }
0x2a84   :  { %v2372_v43 = vmul.f32 %v3226_v41, %v2370_v42 }
0x2a86   :  { %2374 = vrot.lane.b32.xlu1 %v2372_v43, %s3233_s3 }
0x2af8   :  { %v2375_v44 = vpop.permute.xlu1 %2374 }
0x2af9   :  { %v2377_v45 = vadd.f32 %v2375_v44, %v2367_v5 }
0x2afb   :  { %3227 = vtanh.f32 %v2377_v45 }
0x2b05   :  { %v3228_v12 = vpop.eup %3227 }
0x2b06   :  { %2380 = vrot.lane.b32.xlu0 %v3228_v12, %s3232_s23 }
0x2b78   :  { %v2381_v59 = vpop.permute.xlu0 %2380 }
0x2b79   :  { %v2383_v46 = vmul.f32 %v3226_v41, %v2381_v59 }
0x2b7b   :  { %2385 = vrot.lane.b32.xlu1 %v2383_v46, %s3233_s3 }
0x2bed   :  { %v2386_v47 = vpop.permute.xlu1 %2385 }
0x2bee   :  { %2944 = vmatmul.mubr.msk.f32.vlgmr.msra.gmra.mrb[30].mxu0 %vm196_vm3, %v2386_v47 }
0x2cc1   :  { %v2455_v48 = vpop.f32.mrb[30].mxu0 }
0x2cc2   :  { %v2456_v49 = vadd.f32 %v3547_v60, %v2455_v48  ;;  %v2945_v50 = vpop.f32.mrb[31].mxu0 }
0x2cc4   :  { %2522 = vst [vmem:[%s3702_s9 + $0x38] sm:$0xff] %v2456_v49 }

</bundles_post_ra>
